<compile_context>
chip_gen: v7x
topology: tpu7x:2x2x1
jax: 0.10.0
libtpu: 0.0.40
codegen_flags: <defaults>
</compile_context>

<pallas_src>
import functools

import numpy as np
import jax
import jax.numpy as jnp
from jax import lax
from jax.experimental import pallas as pl
from jax.experimental.pallas import tpu as pltpu

# --- deterministic filters, exactly as built in CannyNet.__init__ ------------
# scipy.signal.gaussian(5, std=1), unnormalized (sum ~2.48), as in the reference.
_g = np.exp(-0.5 * (np.arange(5, dtype=np.float64) - 2.0) ** 2)
G0, G1, G2 = float(_g[0]), float(_g[1]), float(_g[2])   # g0==g4, g1==g3

# Orientation-bin boundaries derived from the reference's
#   round((atan2(gy, gx) * 180/3.14159 + 180) / 45)
# binning.  The NMS result only depends on the bin modulo 4 (opposite
# directional filters are paired by the min()), i.e. which 45-degree axis the
# gradient lies on, decided by these tangent comparisons (reference "pi").
_C = 3.14159
TAN_LO = float(np.tan(_C / 8.0))        # ~tan(22.5 deg)
TAN_HI = float(np.tan(3.0 * _C / 8.0))  # ~tan(67.5 deg)

# Halo rows per side.  Needed stencil radius is 4 (2 gauss + 1 sobel + 1 NMS);
# 8 keeps all DMA row offsets/sizes sublane-aligned for 32-bit inputs.
# TODO(synk): for sub-32-bit inputs (bf16/uint8) bump HALO to the dtype's
# sublane tile (16 / 32) so DMA destinations stay tile-aligned.
HALO = 8
# Default strip height.  ~128 rows is safe on v7x (64 MiB VMEM) up to ~2K wide;
# raise toward 256-512 on v6e (128 MiB VMEM) to amortize per-step overhead.
_DEFAULT_STRIP_ROWS = 128
_LIVE_F32_ARRAYS = 28   # generous bound on simultaneously-live (buf_h, W) temps


def _pick_strip_h(h, target=_DEFAULT_STRIP_ROWS):
  best = 0
  d = 8
  while d <= min(h, target):
    if h % d == 0:
      best = d
    d += 8
  return best if best else h   # fall back to a single whole-image strip


def _canny_kernel(img_hbm, out_ref, buf, sem, *, threshold, img_h, img_w,
                  strip_h, halo):
  """One batch element x one H-strip, entirely in vregs after the strip DMA."""
  buf_h = strip_h + 2 * halo
  b = pl.program_id(0)
  s = pl.program_id(1)
  ns = pl.num_programs(1)
  row0 = s * strip_h                       # first output row of this strip

  # ---- fetch strip + halos (manual DMA; input stays in its native dtype) ----
  main_cps = [
      pltpu.make_async_copy(img_hbm.at[b, c, pl.ds(row0, strip_h), :],
                            buf.at[c, pl.ds(halo, strip_h), :],
                            sem.at[0, c])
      for c in range(3)]
  for cp in main_cps:
    cp.start()

  @pl.when(s > 0)
  def _():
    cps = [pltpu.make_async_copy(img_hbm.at[b, c, pl.ds(row0 - halo, halo), :],
                                 buf.at[c, pl.ds(0, halo), :],
                                 sem.at[1, c])
           for c in range(3)]
    for cp in cps:
      cp.start()
    for cp in cps:
      cp.wait()

  @pl.when(s < ns - 1)
  def _():
    cps = [pltpu.make_async_copy(
        img_hbm.at[b, c, pl.ds(row0 + strip_h, halo), :],
        buf.at[c, pl.ds(halo + strip_h, halo), :],
        sem.at[2, c])
           for c in range(3)]
    for cp in cps:
      cp.start()
    for cp in cps:
      cp.wait()

  for cp in main_cps:
    cp.wait()

  # ---- hoisted zero-pad masks (global row indices; cols are already global) --
  # Out-of-image halo rows of `buf` may hold stale data; every shifted read is
  # masked by the *source* global index, so stale values never reach the strip.
  g_row = (row0 - halo) + lax.broadcasted_iota(jnp.int32, (buf_h, img_w), 0)
  col = lax.broadcasted_iota(jnp.int32, (buf_h, img_w), 1)
  row_m1 = g_row >= 1              # source row g-1 is inside the image
  row_m2 = g_row >= 2
  row_p1 = g_row < img_h - 1       # source row g+1 is inside the image
  row_p2 = g_row < img_h - 2
  col_m1 = col >= 1
  col_m2 = col >= 2
  col_p1 = col < img_w - 1
  col_p2 = col < img_w - 2
  m_se = row_p1 & col_p1
  m_nw = row_m1 & col_m1
  m_sw = row_p1 & col_m1
  m_ne = row_m1 & col_p1

  def rrows(x, dy):   # x[r + dy], cyclic within the buffer (caller masks)
    return pltpu.roll(x, shift=(-dy) % buf_h, axis=0)

  def rcols(x, dx):   # x[., c + dx], cyclic (caller masks)
    return pltpu.roll(x, shift=(-dx) % img_w, axis=1)

  mag = gx_sum = gy_sum = None
  for c in range(3):  # R, G, B
    ch = buf[c].astype(jnp.float32)        # cast in-kernel (review item)
    # 5-tap gaussian, horizontal then vertical (symmetric taps folded).
    t1 = jnp.where(col_m1, rcols(ch, -1), 0.0) + jnp.where(col_p1, rcols(ch, 1), 0.0)
    t2 = jnp.where(col_m2, rcols(ch, -2), 0.0) + jnp.where(col_p2, rcols(ch, 2), 0.0)
    bh = G2 * ch + G1 * t1 + G0 * t2
    u1 = jnp.where(row_m1, rrows(bh, -1), 0.0) + jnp.where(row_p1, rrows(bh, 1), 0.0)
    u2 = jnp.where(row_m2, rrows(bh, -2), 0.0) + jnp.where(row_p2, rrows(bh, 2), 0.0)
    bl = G2 * bh + G1 * u1 + G0 * u2
    # Separable Sobel (cross-correlation, zero padded):
    tv = (jnp.where(row_m1, rrows(bl, -1), 0.0) + 2.0 * bl
          + jnp.where(row_p1, rrows(bl, 1), 0.0))
    gx = jnp.where(col_m1, rcols(tv, -1), 0.0) - jnp.where(col_p1, rcols(tv, 1), 0.0)
    th = (jnp.where(col_m1, rcols(bl, -1), 0.0) + 2.0 * bl
          + jnp.where(col_p1, rcols(bl, 1), 0.0))
    gy = jnp.where(row_m1, rrows(th, -1), 0.0) - jnp.where(row_p1, rrows(th, 1), 0.0)
    m = jnp.sqrt(gx * gx + gy * gy)
    if mag is None:
      mag, gx_sum, gy_sum = m, gx, gy
    else:
      mag, gx_sum, gy_sum = mag + m, gx_sum + gx, gy_sum + gy

  # ---- directional NMS: 8 rolls total, pairs min-reduced immediately --------
  m_ew = jnp.minimum(mag - jnp.where(col_p1, rcols(mag, 1), 0.0),    # E
                     mag - jnp.where(col_m1, rcols(mag, -1), 0.0))   # W
  mag_dn = rrows(mag, 1)      # mag[r+1, c], unmasked (reused for diagonals)
  mag_up = rrows(mag, -1)     # mag[r-1, c], unmasked
  m_ns = jnp.minimum(mag - jnp.where(row_p1, mag_dn, 0.0),           # S
                     mag - jnp.where(row_m1, mag_up, 0.0))           # N
  m_senw = jnp.minimum(mag - jnp.where(m_se, rcols(mag_dn, 1), 0.0),   # SE
                       mag - jnp.where(m_nw, rcols(mag_up, -1), 0.0))  # NW
  m_swne = jnp.minimum(mag - jnp.where(m_sw, rcols(mag_dn, -1), 0.0),  # SW
                       mag - jnp.where(m_ne, rcols(mag_up, 1), 0.0))   # NE

  # ---- orientation -> NMS axis (compare/select; no atan2) -------------------
  ax = jnp.abs(gx_sum)
  ay = jnp.abs(gy_sum)
  m_sel = jnp.where(ay <= TAN_LO * ax, m_ew,                 # E-W axis
                    jnp.where(ay >= TAN_HI * ax, m_ns,       # N-S axis
                              jnp.where(gx_sum * gy_sum > 0.0, m_senw, m_swne)))

  # ---- folded epilogue: is_max & (mag >= threshold) -> {0,1} ----------------
  edge = (m_sel > 0.0) & (mag >= threshold)
  if threshold <= 0.0:
    edge = edge & (mag > 0.0)
  out_ref[0, 0, :, :] = edge[halo:halo + strip_h, :].astype(jnp.float32)


def canny_net(img, threshold=10.0, strip_h=None):
  N, C, H, W = img.shape
  assert C >= 3, "CannyNet uses only the first three (RGB) channels"
  if strip_h is None:
    strip_h = _pick_strip_h(H)
  if strip_h != H:
    assert H % strip_h == 0 and strip_h % 8 == 0, (
        "strip_h must divide H and be a multiple of 8 (or equal H)")
  num_strips = H // strip_h
  buf_h = strip_h + 2 * HALO

  itemsize = jnp.dtype(img.dtype).itemsize
  vmem_est = (3 * buf_h * W * itemsize          # input strip scratch
              + 2 * strip_h * W * 4             # double-buffered output block
              + _LIVE_F32_ARRAYS * buf_h * W * 4)
  vmem_limit = int(min(max(vmem_est, 32 * 1024 * 1024), 64 * 1024 * 1024))

  kernel = functools.partial(
      _canny_kernel, threshold=float(threshold), img_h=H, img_w=W,
      strip_h=strip_h, halo=HALO)

  return pl.pallas_call(
      kernel,
      out_shape=jax.ShapeDtypeStruct((N, 1, H, W), jnp.float32),
      grid=(N, num_strips),
      in_specs=[pl.BlockSpec(memory_space=pl.ANY)],   # raw HBM ref, manual DMA
      out_specs=pl.BlockSpec((1, 1, strip_h, W), lambda b, s: (b, 0, s, 0)),
      scratch_shapes=[
          pltpu.VMEM((3, buf_h, W), img.dtype),       # strip + 2*HALO halo rows
          pltpu.SemaphoreType.DMA((3, 3)),            # [main/top/bot, channel]
      ],
      compiler_params=pltpu.CompilerParams(
          dimension_semantics=("parallel", "parallel"),
          vmem_limit_bytes=vmem_limit),
  )(img)


if __name__ == "__main__":
  key = jax.random.PRNGKey(0)
  # TODO(synk): the reference's flat-index channel gather couples batch
  # elements for N > 1 (an indexing bug in the original code); our per-pixel
  # direction select matches the reference exactly for N == 1, so the demo
  # uses batch=1.  W=128 keeps the lane axis dense; strip_h=8 exercises the
  # multi-strip path (2 strips, interior halo DMAs) at H=16.
  img = jax.random.uniform(key, (1, 3, 16, 128), dtype=jnp.float32) * 255.0
  out = jax.block_until_ready(canny_net(img, threshold=10.0, strip_h=8))
  assert out.shape == (1, 1, 16, 128) and out.dtype == jnp.float32
  print("KERNEL_OK")
</pallas_src>

<mosaic_0001>
module attributes {stable_mosaic.version = 11 : i64} {
  func.func @_canny_kernel(%arg0: i32, %arg1: i32, %arg2: memref<1x3x16x128xf32, #tpu.memory_space<any>>, %arg3: memref<1x1x8x128xf32, #tpu.memory_space<vmem>>, %arg4: memref<3x24x128xf32, #tpu.memory_space<vmem>>, %arg5: memref<3x3x!tpu.dma_semaphore, #tpu.memory_space<semaphore_mem>>) attributes {dimension_semantics = [#tpu.dimension_semantics<parallel>, #tpu.dimension_semantics<parallel>], iteration_bounds = array<i64: 1, 2>, scalar_prefetch = 0 : i64, scratch_operands = 2 : i64, tpu.core_type = #tpu.core_type<tc>, window_params = [{}, {transform_indices = @transform_1, window_bounds = array<i64: 1, 1, 8, 128>}]} {
    %c8_i32 = arith.constant 8 : i32
    %0 = arith.muli %arg1, %c8_i32 : i32
    %c0_i32 = arith.constant 0 : i32
    %c0_i32_0 = arith.constant 0 : i32
    %c0_i32_1 = arith.constant 0 : i32
    %c0_i32_2 = arith.constant 0 : i32
    %c0_i32_3 = arith.constant 0 : i32
    %1 = tpu.memref_slice %arg2[%arg0, %c0_i32, %0, %c0_i32_3] : memref<1x3x16x128xf32, #tpu.memory_space<any>> -> memref<1x1x8x128xf32, #tpu.memory_space<any>>
    %2 = tpu.memref_squeeze %1 : memref<1x1x8x128xf32, #tpu.memory_space<any>> -> memref<8x128xf32, #tpu.memory_space<any>>
    %c8_i32_4 = arith.constant 8 : i32
    %c0_i32_5 = arith.constant 0 : i32
    %3 = tpu.memref_slice %arg4[%c0_i32_0, %c8_i32_4, %c0_i32_5] : memref<3x24x128xf32, #tpu.memory_space<vmem>> -> memref<1x8x128xf32, #tpu.memory_space<vmem>>
    %4 = tpu.memref_squeeze %3 : memref<1x8x128xf32, #tpu.memory_space<vmem>> -> memref<8x128xf32, #tpu.memory_space<vmem>>
    %5 = tpu.memref_slice %arg5[%c0_i32_1, %c0_i32_2] : memref<3x3x!tpu.dma_semaphore, #tpu.memory_space<semaphore_mem>> -> memref<1x1x!tpu.dma_semaphore, #tpu.memory_space<semaphore_mem>>
    %6 = tpu.memref_squeeze %5 : memref<1x1x!tpu.dma_semaphore, #tpu.memory_space<semaphore_mem>> -> memref<!tpu.dma_semaphore, #tpu.memory_space<semaphore_mem>>
    tpu.enqueue_dma source(%2 : memref<8x128xf32, #tpu.memory_space<any>>) target(%4 : memref<8x128xf32, #tpu.memory_space<vmem>>) target_semaphore(%6 : memref<!tpu.dma_semaphore, #tpu.memory_space<semaphore_mem>>)
    %c1_i32 = arith.constant 1 : i32
    %c1_i32_6 = arith.constant 1 : i32
    %c0_i32_7 = arith.constant 0 : i32
    %c1_i32_8 = arith.constant 1 : i32
    %c0_i32_9 = arith.constant 0 : i32
    %7 = tpu.memref_slice %arg2[%arg0, %c1_i32, %0, %c0_i32_9] : memref<1x3x16x128xf32, #tpu.memory_space<any>> -> memref<1x1x8x128xf32, #tpu.memory_space<any>>
    %8 = tpu.memref_squeeze %7 : memref<1x1x8x128xf32, #tpu.memory_space<any>> -> memref<8x128xf32, #tpu.memory_space<any>>
    %c8_i32_10 = arith.constant 8 : i32
    %c0_i32_11 = arith.constant 0 : i32
    %9 = tpu.memref_slice %arg4[%c1_i32_6, %c8_i32_10, %c0_i32_11] : memref<3x24x128xf32, #tpu.memory_space<vmem>> -> memref<1x8x128xf32, #tpu.memory_space<vmem>>
    %10 = tpu.memref_squeeze %9 : memref<1x8x128xf32, #tpu.memory_space<vmem>> -> memref<8x128xf32, #tpu.memory_space<vmem>>
    %11 = tpu.memref_slice %arg5[%c0_i32_7, %c1_i32_8] : memref<3x3x!tpu.dma_semaphore, #tpu.memory_space<semaphore_mem>> -> memref<1x1x!tpu.dma_semaphore, #tpu.memory_space<semaphore_mem>>
    %12 = tpu.memref_squeeze %11 : memref<1x1x!tpu.dma_semaphore, #tpu.memory_space<semaphore_mem>> -> memref<!tpu.dma_semaphore, #tpu.memory_space<semaphore_mem>>
    tpu.enqueue_dma source(%8 : memref<8x128xf32, #tpu.memory_space<any>>) target(%10 : memref<8x128xf32, #tpu.memory_space<vmem>>) target_semaphore(%12 : memref<!tpu.dma_semaphore, #tpu.memory_space<semaphore_mem>>)
    %c2_i32 = arith.constant 2 : i32
    %c2_i32_12 = arith.constant 2 : i32
    %c0_i32_13 = arith.constant 0 : i32
    %c2_i32_14 = arith.constant 2 : i32
    %c0_i32_15 = arith.constant 0 : i32
    %13 = tpu.memref_slice %arg2[%arg0, %c2_i32, %0, %c0_i32_15] : memref<1x3x16x128xf32, #tpu.memory_space<any>> -> memref<1x1x8x128xf32, #tpu.memory_space<any>>
    %14 = tpu.memref_squeeze %13 : memref<1x1x8x128xf32, #tpu.memory_space<any>> -> memref<8x128xf32, #tpu.memory_space<any>>
    %c8_i32_16 = arith.constant 8 : i32
    %c0_i32_17 = arith.constant 0 : i32
    %15 = tpu.memref_slice %arg4[%c2_i32_12, %c8_i32_16, %c0_i32_17] : memref<3x24x128xf32, #tpu.memory_space<vmem>> -> memref<1x8x128xf32, #tpu.memory_space<vmem>>
    %16 = tpu.memref_squeeze %15 : memref<1x8x128xf32, #tpu.memory_space<vmem>> -> memref<8x128xf32, #tpu.memory_space<vmem>>
    %17 = tpu.memref_slice %arg5[%c0_i32_13, %c2_i32_14] : memref<3x3x!tpu.dma_semaphore, #tpu.memory_space<semaphore_mem>> -> memref<1x1x!tpu.dma_semaphore, #tpu.memory_space<semaphore_mem>>
    %18 = tpu.memref_squeeze %17 : memref<1x1x!tpu.dma_semaphore, #tpu.memory_space<semaphore_mem>> -> memref<!tpu.dma_semaphore, #tpu.memory_space<semaphore_mem>>
    tpu.enqueue_dma source(%14 : memref<8x128xf32, #tpu.memory_space<any>>) target(%16 : memref<8x128xf32, #tpu.memory_space<vmem>>) target_semaphore(%18 : memref<!tpu.dma_semaphore, #tpu.memory_space<semaphore_mem>>)
    %c0_i32_18 = arith.constant 0 : i32
    %19 = arith.cmpi sgt, %arg1, %c0_i32_18 : i32
    %20 = arith.extui %19 : i1 to i32
    %c0_i32_19 = arith.constant 0 : i32
    %21 = arith.cmpi ne, %20, %c0_i32_19 : i32
    scf.if %21 {
      %c8_i32_196 = arith.constant 8 : i32
      %387 = arith.subi %0, %c8_i32_196 : i32
      %c8_i32_197 = arith.constant 8 : i32
      %388 = arith.subi %0, %c8_i32_197 : i32
      %c8_i32_198 = arith.constant 8 : i32
      %389 = arith.subi %0, %c8_i32_198 : i32
      %c0_i32_199 = arith.constant 0 : i32
      %c0_i32_200 = arith.constant 0 : i32
      %c1_i32_201 = arith.constant 1 : i32
      %c0_i32_202 = arith.constant 0 : i32
      %c0_i32_203 = arith.constant 0 : i32
      %390 = tpu.memref_slice %arg2[%arg0, %c0_i32_199, %387, %c0_i32_203] : memref<1x3x16x128xf32, #tpu.memory_space<any>> -> memref<1x1x8x128xf32, #tpu.memory_space<any>>
      %391 = tpu.memref_squeeze %390 : memref<1x1x8x128xf32, #tpu.memory_space<any>> -> memref<8x128xf32, #tpu.memory_space<any>>
      %c0_i32_204 = arith.constant 0 : i32
      %c0_i32_205 = arith.constant 0 : i32
      %392 = tpu.memref_slice %arg4[%c0_i32_200, %c0_i32_204, %c0_i32_205] : memref<3x24x128xf32, #tpu.memory_space<vmem>> -> memref<1x8x128xf32, #tpu.memory_space<vmem>>
      %393 = tpu.memref_squeeze %392 : memref<1x8x128xf32, #tpu.memory_space<vmem>> -> memref<8x128xf32, #tpu.memory_space<vmem>>
      %394 = tpu.memref_slice %arg5[%c1_i32_201, %c0_i32_202] : memref<3x3x!tpu.dma_semaphore, #tpu.memory_space<semaphore_mem>> -> memref<1x1x!tpu.dma_semaphore, #tpu.memory_space<semaphore_mem>>
      %395 = tpu.memref_squeeze %394 : memref<1x1x!tpu.dma_semaphore, #tpu.memory_space<semaphore_mem>> -> memref<!tpu.dma_semaphore, #tpu.memory_space<semaphore_mem>>
      tpu.enqueue_dma source(%391 : memref<8x128xf32, #tpu.memory_space<any>>) target(%393 : memref<8x128xf32, #tpu.memory_space<vmem>>) target_semaphore(%395 : memref<!tpu.dma_semaphore, #tpu.memory_space<semaphore_mem>>)
      %c1_i32_206 = arith.constant 1 : i32
      %c1_i32_207 = arith.constant 1 : i32
      %c1_i32_208 = arith.constant 1 : i32
      %c1_i32_209 = arith.constant 1 : i32
      %c0_i32_210 = arith.constant 0 : i32
      %396 = tpu.memref_slice %arg2[%arg0, %c1_i32_206, %388, %c0_i32_210] : memref<1x3x16x128xf32, #tpu.memory_space<any>> -> memref<1x1x8x128xf32, #tpu.memory_space<any>>
      %397 = tpu.memref_squeeze %396 : memref<1x1x8x128xf32, #tpu.memory_space<any>> -> memref<8x128xf32, #tpu.memory_space<any>>
      %c0_i32_211 = arith.constant 0 : i32
      %c0_i32_212 = arith.constant 0 : i32
      %398 = tpu.memref_slice %arg4[%c1_i32_207, %c0_i32_211, %c0_i32_212] : memref<3x24x128xf32, #tpu.memory_space<vmem>> -> memref<1x8x128xf32, #tpu.memory_space<vmem>>
      %399 = tpu.memref_squeeze %398 : memref<1x8x128xf32, #tpu.memory_space<vmem>> -> memref<8x128xf32, #tpu.memory_space<vmem>>
      %400 = tpu.memref_slice %arg5[%c1_i32_208, %c1_i32_209] : memref<3x3x!tpu.dma_semaphore, #tpu.memory_space<semaphore_mem>> -> memref<1x1x!tpu.dma_semaphore, #tpu.memory_space<semaphore_mem>>
      %401 = tpu.memref_squeeze %400 : memref<1x1x!tpu.dma_semaphore, #tpu.memory_space<semaphore_mem>> -> memref<!tpu.dma_semaphore, #tpu.memory_space<semaphore_mem>>
      tpu.enqueue_dma source(%397 : memref<8x128xf32, #tpu.memory_space<any>>) target(%399 : memref<8x128xf32, #tpu.memory_space<vmem>>) target_semaphore(%401 : memref<!tpu.dma_semaphore, #tpu.memory_space<semaphore_mem>>)
      %c2_i32_213 = arith.constant 2 : i32
      %c2_i32_214 = arith.constant 2 : i32
      %c1_i32_215 = arith.constant 1 : i32
      %c2_i32_216 = arith.constant 2 : i32
      %c0_i32_217 = arith.constant 0 : i32
      %402 = tpu.memref_slice %arg2[%arg0, %c2_i32_213, %389, %c0_i32_217] : memref<1x3x16x128xf32, #tpu.memory_space<any>> -> memref<1x1x8x128xf32, #tpu.memory_space<any>>
      %403 = tpu.memref_squeeze %402 : memref<1x1x8x128xf32, #tpu.memory_space<any>> -> memref<8x128xf32, #tpu.memory_space<any>>
      %c0_i32_218 = arith.constant 0 : i32
      %c0_i32_219 = arith.constant 0 : i32
      %404 = tpu.memref_slice %arg4[%c2_i32_214, %c0_i32_218, %c0_i32_219] : memref<3x24x128xf32, #tpu.memory_space<vmem>> -> memref<1x8x128xf32, #tpu.memory_space<vmem>>
      %405 = tpu.memref_squeeze %404 : memref<1x8x128xf32, #tpu.memory_space<vmem>> -> memref<8x128xf32, #tpu.memory_space<vmem>>
      %406 = tpu.memref_slice %arg5[%c1_i32_215, %c2_i32_216] : memref<3x3x!tpu.dma_semaphore, #tpu.memory_space<semaphore_mem>> -> memref<1x1x!tpu.dma_semaphore, #tpu.memory_space<semaphore_mem>>
      %407 = tpu.memref_squeeze %406 : memref<1x1x!tpu.dma_semaphore, #tpu.memory_space<semaphore_mem>> -> memref<!tpu.dma_semaphore, #tpu.memory_space<semaphore_mem>>
      tpu.enqueue_dma source(%403 : memref<8x128xf32, #tpu.memory_space<any>>) target(%405 : memref<8x128xf32, #tpu.memory_space<vmem>>) target_semaphore(%407 : memref<!tpu.dma_semaphore, #tpu.memory_space<semaphore_mem>>)
      %c0_i32_220 = arith.constant 0 : i32
      %c0_i32_221 = arith.constant 0 : i32
      %c1_i32_222 = arith.constant 1 : i32
      %c0_i32_223 = arith.constant 0 : i32
      %c0_i32_224 = arith.constant 0 : i32
      %408 = tpu.memref_slice %arg2[%arg0, %c0_i32_220, %387, %c0_i32_224] : memref<1x3x16x128xf32, #tpu.memory_space<any>> -> memref<1x1x8x128xf32, #tpu.memory_space<any>>
      %409 = tpu.memref_squeeze %408 : memref<1x1x8x128xf32, #tpu.memory_space<any>> -> memref<8x128xf32, #tpu.memory_space<any>>
      %c0_i32_225 = arith.constant 0 : i32
      %c0_i32_226 = arith.constant 0 : i32
      %410 = tpu.memref_slice %arg4[%c0_i32_221, %c0_i32_225, %c0_i32_226] : memref<3x24x128xf32, #tpu.memory_space<vmem>> -> memref<1x8x128xf32, #tpu.memory_space<vmem>>
      %411 = tpu.memref_squeeze %410 : memref<1x8x128xf32, #tpu.memory_space<vmem>> -> memref<8x128xf32, #tpu.memory_space<vmem>>
      %412 = tpu.memref_slice %arg5[%c1_i32_222, %c0_i32_223] : memref<3x3x!tpu.dma_semaphore, #tpu.memory_space<semaphore_mem>> -> memref<1x1x!tpu.dma_semaphore, #tpu.memory_space<semaphore_mem>>
      %413 = tpu.memref_squeeze %412 : memref<1x1x!tpu.dma_semaphore, #tpu.memory_space<semaphore_mem>> -> memref<!tpu.dma_semaphore, #tpu.memory_space<semaphore_mem>>
      tpu.wait_dma2 semaphore(%413 : memref<!tpu.dma_semaphore, #tpu.memory_space<semaphore_mem>>) src(%409 : memref<8x128xf32, #tpu.memory_space<any>>) dst(%411 : memref<8x128xf32, #tpu.memory_space<vmem>>)
      %c1_i32_227 = arith.constant 1 : i32
      %c1_i32_228 = arith.constant 1 : i32
      %c1_i32_229 = arith.constant 1 : i32
      %c1_i32_230 = arith.constant 1 : i32
      %c0_i32_231 = arith.constant 0 : i32
      %414 = tpu.memref_slice %arg2[%arg0, %c1_i32_227, %388, %c0_i32_231] : memref<1x3x16x128xf32, #tpu.memory_space<any>> -> memref<1x1x8x128xf32, #tpu.memory_space<any>>
      %415 = tpu.memref_squeeze %414 : memref<1x1x8x128xf32, #tpu.memory_space<any>> -> memref<8x128xf32, #tpu.memory_space<any>>
      %c0_i32_232 = arith.constant 0 : i32
      %c0_i32_233 = arith.constant 0 : i32
      %416 = tpu.memref_slice %arg4[%c1_i32_228, %c0_i32_232, %c0_i32_233] : memref<3x24x128xf32, #tpu.memory_space<vmem>> -> memref<1x8x128xf32, #tpu.memory_space<vmem>>
      %417 = tpu.memref_squeeze %416 : memref<1x8x128xf32, #tpu.memory_space<vmem>> -> memref<8x128xf32, #tpu.memory_space<vmem>>
      %418 = tpu.memref_slice %arg5[%c1_i32_229, %c1_i32_230] : memref<3x3x!tpu.dma_semaphore, #tpu.memory_space<semaphore_mem>> -> memref<1x1x!tpu.dma_semaphore, #tpu.memory_space<semaphore_mem>>
      %419 = tpu.memref_squeeze %418 : memref<1x1x!tpu.dma_semaphore, #tpu.memory_space<semaphore_mem>> -> memref<!tpu.dma_semaphore, #tpu.memory_space<semaphore_mem>>
      tpu.wait_dma2 semaphore(%419 : memref<!tpu.dma_semaphore, #tpu.memory_space<semaphore_mem>>) src(%415 : memref<8x128xf32, #tpu.memory_space<any>>) dst(%417 : memref<8x128xf32, #tpu.memory_space<vmem>>)
      %c2_i32_234 = arith.constant 2 : i32
      %c2_i32_235 = arith.constant 2 : i32
      %c1_i32_236 = arith.constant 1 : i32
      %c2_i32_237 = arith.constant 2 : i32
      %c0_i32_238 = arith.constant 0 : i32
      %420 = tpu.memref_slice %arg2[%arg0, %c2_i32_234, %389, %c0_i32_238] : memref<1x3x16x128xf32, #tpu.memory_space<any>> -> memref<1x1x8x128xf32, #tpu.memory_space<any>>
      %421 = tpu.memref_squeeze %420 : memref<1x1x8x128xf32, #tpu.memory_space<any>> -> memref<8x128xf32, #tpu.memory_space<any>>
      %c0_i32_239 = arith.constant 0 : i32
      %c0_i32_240 = arith.constant 0 : i32
      %422 = tpu.memref_slice %arg4[%c2_i32_235, %c0_i32_239, %c0_i32_240] : memref<3x24x128xf32, #tpu.memory_space<vmem>> -> memref<1x8x128xf32, #tpu.memory_space<vmem>>
      %423 = tpu.memref_squeeze %422 : memref<1x8x128xf32, #tpu.memory_space<vmem>> -> memref<8x128xf32, #tpu.memory_space<vmem>>
      %424 = tpu.memref_slice %arg5[%c1_i32_236, %c2_i32_237] : memref<3x3x!tpu.dma_semaphore, #tpu.memory_space<semaphore_mem>> -> memref<1x1x!tpu.dma_semaphore, #tpu.memory_space<semaphore_mem>>
      %425 = tpu.memref_squeeze %424 : memref<1x1x!tpu.dma_semaphore, #tpu.memory_space<semaphore_mem>> -> memref<!tpu.dma_semaphore, #tpu.memory_space<semaphore_mem>>
      tpu.wait_dma2 semaphore(%425 : memref<!tpu.dma_semaphore, #tpu.memory_space<semaphore_mem>>) src(%421 : memref<8x128xf32, #tpu.memory_space<any>>) dst(%423 : memref<8x128xf32, #tpu.memory_space<vmem>>)
    } else {
    }
    %c1_i32_20 = arith.constant 1 : i32
    %22 = arith.cmpi slt, %arg1, %c1_i32_20 : i32
    %23 = arith.extui %22 : i1 to i32
    %c0_i32_21 = arith.constant 0 : i32
    %24 = arith.cmpi ne, %23, %c0_i32_21 : i32
    scf.if %24 {
      %c8_i32_196 = arith.constant 8 : i32
      %387 = arith.addi %0, %c8_i32_196 : i32
      %c8_i32_197 = arith.constant 8 : i32
      %388 = arith.addi %0, %c8_i32_197 : i32
      %c8_i32_198 = arith.constant 8 : i32
      %389 = arith.addi %0, %c8_i32_198 : i32
      %c0_i32_199 = arith.constant 0 : i32
      %c0_i32_200 = arith.constant 0 : i32
      %c2_i32_201 = arith.constant 2 : i32
      %c0_i32_202 = arith.constant 0 : i32
      %c0_i32_203 = arith.constant 0 : i32
      %390 = tpu.memref_slice %arg2[%arg0, %c0_i32_199, %387, %c0_i32_203] : memref<1x3x16x128xf32, #tpu.memory_space<any>> -> memref<1x1x8x128xf32, #tpu.memory_space<any>>
      %391 = tpu.memref_squeeze %390 : memref<1x1x8x128xf32, #tpu.memory_space<any>> -> memref<8x128xf32, #tpu.memory_space<any>>
      %c16_i32 = arith.constant 16 : i32
      %c0_i32_204 = arith.constant 0 : i32
      %392 = tpu.memref_slice %arg4[%c0_i32_200, %c16_i32, %c0_i32_204] : memref<3x24x128xf32, #tpu.memory_space<vmem>> -> memref<1x8x128xf32, #tpu.memory_space<vmem>>
      %393 = tpu.memref_squeeze %392 : memref<1x8x128xf32, #tpu.memory_space<vmem>> -> memref<8x128xf32, #tpu.memory_space<vmem>>
      %394 = tpu.memref_slice %arg5[%c2_i32_201, %c0_i32_202] : memref<3x3x!tpu.dma_semaphore, #tpu.memory_space<semaphore_mem>> -> memref<1x1x!tpu.dma_semaphore, #tpu.memory_space<semaphore_mem>>
      %395 = tpu.memref_squeeze %394 : memref<1x1x!tpu.dma_semaphore, #tpu.memory_space<semaphore_mem>> -> memref<!tpu.dma_semaphore, #tpu.memory_space<semaphore_mem>>
      tpu.enqueue_dma source(%391 : memref<8x128xf32, #tpu.memory_space<any>>) target(%393 : memref<8x128xf32, #tpu.memory_space<vmem>>) target_semaphore(%395 : memref<!tpu.dma_semaphore, #tpu.memory_space<semaphore_mem>>)
      %c1_i32_205 = arith.constant 1 : i32
      %c1_i32_206 = arith.constant 1 : i32
      %c2_i32_207 = arith.constant 2 : i32
      %c1_i32_208 = arith.constant 1 : i32
      %c0_i32_209 = arith.constant 0 : i32
      %396 = tpu.memref_slice %arg2[%arg0, %c1_i32_205, %388, %c0_i32_209] : memref<1x3x16x128xf32, #tpu.memory_space<any>> -> memref<1x1x8x128xf32, #tpu.memory_space<any>>
      %397 = tpu.memref_squeeze %396 : memref<1x1x8x128xf32, #tpu.memory_space<any>> -> memref<8x128xf32, #tpu.memory_space<any>>
      %c16_i32_210 = arith.constant 16 : i32
      %c0_i32_211 = arith.constant 0 : i32
      %398 = tpu.memref_slice %arg4[%c1_i32_206, %c16_i32_210, %c0_i32_211] : memref<3x24x128xf32, #tpu.memory_space<vmem>> -> memref<1x8x128xf32, #tpu.memory_space<vmem>>
      %399 = tpu.memref_squeeze %398 : memref<1x8x128xf32, #tpu.memory_space<vmem>> -> memref<8x128xf32, #tpu.memory_space<vmem>>
      %400 = tpu.memref_slice %arg5[%c2_i32_207, %c1_i32_208] : memref<3x3x!tpu.dma_semaphore, #tpu.memory_space<semaphore_mem>> -> memref<1x1x!tpu.dma_semaphore, #tpu.memory_space<semaphore_mem>>
      %401 = tpu.memref_squeeze %400 : memref<1x1x!tpu.dma_semaphore, #tpu.memory_space<semaphore_mem>> -> memref<!tpu.dma_semaphore, #tpu.memory_space<semaphore_mem>>
      tpu.enqueue_dma source(%397 : memref<8x128xf32, #tpu.memory_space<any>>) target(%399 : memref<8x128xf32, #tpu.memory_space<vmem>>) target_semaphore(%401 : memref<!tpu.dma_semaphore, #tpu.memory_space<semaphore_mem>>)
      %c2_i32_212 = arith.constant 2 : i32
      %c2_i32_213 = arith.constant 2 : i32
      %c2_i32_214 = arith.constant 2 : i32
      %c2_i32_215 = arith.constant 2 : i32
      %c0_i32_216 = arith.constant 0 : i32
      %402 = tpu.memref_slice %arg2[%arg0, %c2_i32_212, %389, %c0_i32_216] : memref<1x3x16x128xf32, #tpu.memory_space<any>> -> memref<1x1x8x128xf32, #tpu.memory_space<any>>
      %403 = tpu.memref_squeeze %402 : memref<1x1x8x128xf32, #tpu.memory_space<any>> -> memref<8x128xf32, #tpu.memory_space<any>>
      %c16_i32_217 = arith.constant 16 : i32
      %c0_i32_218 = arith.constant 0 : i32
      %404 = tpu.memref_slice %arg4[%c2_i32_213, %c16_i32_217, %c0_i32_218] : memref<3x24x128xf32, #tpu.memory_space<vmem>> -> memref<1x8x128xf32, #tpu.memory_space<vmem>>
      %405 = tpu.memref_squeeze %404 : memref<1x8x128xf32, #tpu.memory_space<vmem>> -> memref<8x128xf32, #tpu.memory_space<vmem>>
      %406 = tpu.memref_slice %arg5[%c2_i32_214, %c2_i32_215] : memref<3x3x!tpu.dma_semaphore, #tpu.memory_space<semaphore_mem>> -> memref<1x1x!tpu.dma_semaphore, #tpu.memory_space<semaphore_mem>>
      %407 = tpu.memref_squeeze %406 : memref<1x1x!tpu.dma_semaphore, #tpu.memory_space<semaphore_mem>> -> memref<!tpu.dma_semaphore, #tpu.memory_space<semaphore_mem>>
      tpu.enqueue_dma source(%403 : memref<8x128xf32, #tpu.memory_space<any>>) target(%405 : memref<8x128xf32, #tpu.memory_space<vmem>>) target_semaphore(%407 : memref<!tpu.dma_semaphore, #tpu.memory_space<semaphore_mem>>)
      %c0_i32_219 = arith.constant 0 : i32
      %c0_i32_220 = arith.constant 0 : i32
      %c2_i32_221 = arith.constant 2 : i32
      %c0_i32_222 = arith.constant 0 : i32
      %c0_i32_223 = arith.constant 0 : i32
      %408 = tpu.memref_slice %arg2[%arg0, %c0_i32_219, %387, %c0_i32_223] : memref<1x3x16x128xf32, #tpu.memory_space<any>> -> memref<1x1x8x128xf32, #tpu.memory_space<any>>
      %409 = tpu.memref_squeeze %408 : memref<1x1x8x128xf32, #tpu.memory_space<any>> -> memref<8x128xf32, #tpu.memory_space<any>>
      %c16_i32_224 = arith.constant 16 : i32
      %c0_i32_225 = arith.constant 0 : i32
      %410 = tpu.memref_slice %arg4[%c0_i32_220, %c16_i32_224, %c0_i32_225] : memref<3x24x128xf32, #tpu.memory_space<vmem>> -> memref<1x8x128xf32, #tpu.memory_space<vmem>>
      %411 = tpu.memref_squeeze %410 : memref<1x8x128xf32, #tpu.memory_space<vmem>> -> memref<8x128xf32, #tpu.memory_space<vmem>>
      %412 = tpu.memref_slice %arg5[%c2_i32_221, %c0_i32_222] : memref<3x3x!tpu.dma_semaphore, #tpu.memory_space<semaphore_mem>> -> memref<1x1x!tpu.dma_semaphore, #tpu.memory_space<semaphore_mem>>
      %413 = tpu.memref_squeeze %412 : memref<1x1x!tpu.dma_semaphore, #tpu.memory_space<semaphore_mem>> -> memref<!tpu.dma_semaphore, #tpu.memory_space<semaphore_mem>>
      tpu.wait_dma2 semaphore(%413 : memref<!tpu.dma_semaphore, #tpu.memory_space<semaphore_mem>>) src(%409 : memref<8x128xf32, #tpu.memory_space<any>>) dst(%411 : memref<8x128xf32, #tpu.memory_space<vmem>>)
      %c1_i32_226 = arith.constant 1 : i32
      %c1_i32_227 = arith.constant 1 : i32
      %c2_i32_228 = arith.constant 2 : i32
      %c1_i32_229 = arith.constant 1 : i32
      %c0_i32_230 = arith.constant 0 : i32
      %414 = tpu.memref_slice %arg2[%arg0, %c1_i32_226, %388, %c0_i32_230] : memref<1x3x16x128xf32, #tpu.memory_space<any>> -> memref<1x1x8x128xf32, #tpu.memory_space<any>>
      %415 = tpu.memref_squeeze %414 : memref<1x1x8x128xf32, #tpu.memory_space<any>> -> memref<8x128xf32, #tpu.memory_space<any>>
      %c16_i32_231 = arith.constant 16 : i32
      %c0_i32_232 = arith.constant 0 : i32
      %416 = tpu.memref_slice %arg4[%c1_i32_227, %c16_i32_231, %c0_i32_232] : memref<3x24x128xf32, #tpu.memory_space<vmem>> -> memref<1x8x128xf32, #tpu.memory_space<vmem>>
      %417 = tpu.memref_squeeze %416 : memref<1x8x128xf32, #tpu.memory_space<vmem>> -> memref<8x128xf32, #tpu.memory_space<vmem>>
      %418 = tpu.memref_slice %arg5[%c2_i32_228, %c1_i32_229] : memref<3x3x!tpu.dma_semaphore, #tpu.memory_space<semaphore_mem>> -> memref<1x1x!tpu.dma_semaphore, #tpu.memory_space<semaphore_mem>>
      %419 = tpu.memref_squeeze %418 : memref<1x1x!tpu.dma_semaphore, #tpu.memory_space<semaphore_mem>> -> memref<!tpu.dma_semaphore, #tpu.memory_space<semaphore_mem>>
      tpu.wait_dma2 semaphore(%419 : memref<!tpu.dma_semaphore, #tpu.memory_space<semaphore_mem>>) src(%415 : memref<8x128xf32, #tpu.memory_space<any>>) dst(%417 : memref<8x128xf32, #tpu.memory_space<vmem>>)
      %c2_i32_233 = arith.constant 2 : i32
      %c2_i32_234 = arith.constant 2 : i32
      %c2_i32_235 = arith.constant 2 : i32
      %c2_i32_236 = arith.constant 2 : i32
      %c0_i32_237 = arith.constant 0 : i32
      %420 = tpu.memref_slice %arg2[%arg0, %c2_i32_233, %389, %c0_i32_237] : memref<1x3x16x128xf32, #tpu.memory_space<any>> -> memref<1x1x8x128xf32, #tpu.memory_space<any>>
      %421 = tpu.memref_squeeze %420 : memref<1x1x8x128xf32, #tpu.memory_space<any>> -> memref<8x128xf32, #tpu.memory_space<any>>
      %c16_i32_238 = arith.constant 16 : i32
      %c0_i32_239 = arith.constant 0 : i32
      %422 = tpu.memref_slice %arg4[%c2_i32_234, %c16_i32_238, %c0_i32_239] : memref<3x24x128xf32, #tpu.memory_space<vmem>> -> memref<1x8x128xf32, #tpu.memory_space<vmem>>
      %423 = tpu.memref_squeeze %422 : memref<1x8x128xf32, #tpu.memory_space<vmem>> -> memref<8x128xf32, #tpu.memory_space<vmem>>
      %424 = tpu.memref_slice %arg5[%c2_i32_235, %c2_i32_236] : memref<3x3x!tpu.dma_semaphore, #tpu.memory_space<semaphore_mem>> -> memref<1x1x!tpu.dma_semaphore, #tpu.memory_space<semaphore_mem>>
      %425 = tpu.memref_squeeze %424 : memref<1x1x!tpu.dma_semaphore, #tpu.memory_space<semaphore_mem>> -> memref<!tpu.dma_semaphore, #tpu.memory_space<semaphore_mem>>
      tpu.wait_dma2 semaphore(%425 : memref<!tpu.dma_semaphore, #tpu.memory_space<semaphore_mem>>) src(%421 : memref<8x128xf32, #tpu.memory_space<any>>) dst(%423 : memref<8x128xf32, #tpu.memory_space<vmem>>)
    } else {
    }
    %c0_i32_22 = arith.constant 0 : i32
    %c0_i32_23 = arith.constant 0 : i32
    %c0_i32_24 = arith.constant 0 : i32
    %c0_i32_25 = arith.constant 0 : i32
    %c0_i32_26 = arith.constant 0 : i32
    %25 = tpu.memref_slice %arg2[%arg0, %c0_i32_22, %0, %c0_i32_26] : memref<1x3x16x128xf32, #tpu.memory_space<any>> -> memref<1x1x8x128xf32, #tpu.memory_space<any>>
    %26 = tpu.memref_squeeze %25 : memref<1x1x8x128xf32, #tpu.memory_space<any>> -> memref<8x128xf32, #tpu.memory_space<any>>
    %c8_i32_27 = arith.constant 8 : i32
    %c0_i32_28 = arith.constant 0 : i32
    %27 = tpu.memref_slice %arg4[%c0_i32_23, %c8_i32_27, %c0_i32_28] : memref<3x24x128xf32, #tpu.memory_space<vmem>> -> memref<1x8x128xf32, #tpu.memory_space<vmem>>
    %28 = tpu.memref_squeeze %27 : memref<1x8x128xf32, #tpu.memory_space<vmem>> -> memref<8x128xf32, #tpu.memory_space<vmem>>
    %29 = tpu.memref_slice %arg5[%c0_i32_24, %c0_i32_25] : memref<3x3x!tpu.dma_semaphore, #tpu.memory_space<semaphore_mem>> -> memref<1x1x!tpu.dma_semaphore, #tpu.memory_space<semaphore_mem>>
    %30 = tpu.memref_squeeze %29 : memref<1x1x!tpu.dma_semaphore, #tpu.memory_space<semaphore_mem>> -> memref<!tpu.dma_semaphore, #tpu.memory_space<semaphore_mem>>
    tpu.wait_dma2 semaphore(%30 : memref<!tpu.dma_semaphore, #tpu.memory_space<semaphore_mem>>) src(%26 : memref<8x128xf32, #tpu.memory_space<any>>) dst(%28 : memref<8x128xf32, #tpu.memory_space<vmem>>)
    %c1_i32_29 = arith.constant 1 : i32
    %c1_i32_30 = arith.constant 1 : i32
    %c0_i32_31 = arith.constant 0 : i32
    %c1_i32_32 = arith.constant 1 : i32
    %c0_i32_33 = arith.constant 0 : i32
    %31 = tpu.memref_slice %arg2[%arg0, %c1_i32_29, %0, %c0_i32_33] : memref<1x3x16x128xf32, #tpu.memory_space<any>> -> memref<1x1x8x128xf32, #tpu.memory_space<any>>
    %32 = tpu.memref_squeeze %31 : memref<1x1x8x128xf32, #tpu.memory_space<any>> -> memref<8x128xf32, #tpu.memory_space<any>>
    %c8_i32_34 = arith.constant 8 : i32
    %c0_i32_35 = arith.constant 0 : i32
    %33 = tpu.memref_slice %arg4[%c1_i32_30, %c8_i32_34, %c0_i32_35] : memref<3x24x128xf32, #tpu.memory_space<vmem>> -> memref<1x8x128xf32, #tpu.memory_space<vmem>>
    %34 = tpu.memref_squeeze %33 : memref<1x8x128xf32, #tpu.memory_space<vmem>> -> memref<8x128xf32, #tpu.memory_space<vmem>>
    %35 = tpu.memref_slice %arg5[%c0_i32_31, %c1_i32_32] : memref<3x3x!tpu.dma_semaphore, #tpu.memory_space<semaphore_mem>> -> memref<1x1x!tpu.dma_semaphore, #tpu.memory_space<semaphore_mem>>
    %36 = tpu.memref_squeeze %35 : memref<1x1x!tpu.dma_semaphore, #tpu.memory_space<semaphore_mem>> -> memref<!tpu.dma_semaphore, #tpu.memory_space<semaphore_mem>>
    tpu.wait_dma2 semaphore(%36 : memref<!tpu.dma_semaphore, #tpu.memory_space<semaphore_mem>>) src(%32 : memref<8x128xf32, #tpu.memory_space<any>>) dst(%34 : memref<8x128xf32, #tpu.memory_space<vmem>>)
    %c2_i32_36 = arith.constant 2 : i32
    %c2_i32_37 = arith.constant 2 : i32
    %c0_i32_38 = arith.constant 0 : i32
    %c2_i32_39 = arith.constant 2 : i32
    %c0_i32_40 = arith.constant 0 : i32
    %37 = tpu.memref_slice %arg2[%arg0, %c2_i32_36, %0, %c0_i32_40] : memref<1x3x16x128xf32, #tpu.memory_space<any>> -> memref<1x1x8x128xf32, #tpu.memory_space<any>>
    %38 = tpu.memref_squeeze %37 : memref<1x1x8x128xf32, #tpu.memory_space<any>> -> memref<8x128xf32, #tpu.memory_space<any>>
    %c8_i32_41 = arith.constant 8 : i32
    %c0_i32_42 = arith.constant 0 : i32
    %39 = tpu.memref_slice %arg4[%c2_i32_37, %c8_i32_41, %c0_i32_42] : memref<3x24x128xf32, #tpu.memory_space<vmem>> -> memref<1x8x128xf32, #tpu.memory_space<vmem>>
    %40 = tpu.memref_squeeze %39 : memref<1x8x128xf32, #tpu.memory_space<vmem>> -> memref<8x128xf32, #tpu.memory_space<vmem>>
    %41 = tpu.memref_slice %arg5[%c0_i32_38, %c2_i32_39] : memref<3x3x!tpu.dma_semaphore, #tpu.memory_space<semaphore_mem>> -> memref<1x1x!tpu.dma_semaphore, #tpu.memory_space<semaphore_mem>>
    %42 = tpu.memref_squeeze %41 : memref<1x1x!tpu.dma_semaphore, #tpu.memory_space<semaphore_mem>> -> memref<!tpu.dma_semaphore, #tpu.memory_space<semaphore_mem>>
    tpu.wait_dma2 semaphore(%42 : memref<!tpu.dma_semaphore, #tpu.memory_space<semaphore_mem>>) src(%38 : memref<8x128xf32, #tpu.memory_space<any>>) dst(%40 : memref<8x128xf32, #tpu.memory_space<vmem>>)
    %c8_i32_43 = arith.constant 8 : i32
    %43 = arith.subi %0, %c8_i32_43 : i32
    %44 = tpu.iota {dimensions = array<i32: 0>} : vector<24x128xi32>
    %45 = vector.broadcast %43 : i32 to vector<24x128xi32>
    %46 = arith.addi %45, %44 : vector<24x128xi32>
    %47 = tpu.iota {dimensions = array<i32: 1>} : vector<24x128xi32>
    %c1_i32_44 = arith.constant 1 : i32
    %48 = vector.broadcast %c1_i32_44 : i32 to vector<24x128xi32>
    %49 = arith.cmpi sge, %46, %48 : vector<24x128xi32>
    %c2_i32_45 = arith.constant 2 : i32
    %50 = vector.broadcast %c2_i32_45 : i32 to vector<24x128xi32>
    %51 = arith.cmpi sge, %46, %50 : vector<24x128xi32>
    %c15_i32 = arith.constant 15 : i32
    %52 = vector.broadcast %c15_i32 : i32 to vector<24x128xi32>
    %53 = arith.cmpi slt, %46, %52 : vector<24x128xi32>
    %c14_i32 = arith.constant 14 : i32
    %54 = vector.broadcast %c14_i32 : i32 to vector<24x128xi32>
    %55 = arith.cmpi slt, %46, %54 : vector<24x128xi32>
    %c1_i32_46 = arith.constant 1 : i32
    %56 = vector.broadcast %c1_i32_46 : i32 to vector<24x128xi32>
    %57 = arith.cmpi sge, %47, %56 : vector<24x128xi32>
    %c2_i32_47 = arith.constant 2 : i32
    %58 = vector.broadcast %c2_i32_47 : i32 to vector<24x128xi32>
    %59 = arith.cmpi sge, %47, %58 : vector<24x128xi32>
    %c127_i32 = arith.constant 127 : i32
    %60 = vector.broadcast %c127_i32 : i32 to vector<24x128xi32>
    %61 = arith.cmpi slt, %47, %60 : vector<24x128xi32>
    %c126_i32 = arith.constant 126 : i32
    %62 = vector.broadcast %c126_i32 : i32 to vector<24x128xi32>
    %63 = arith.cmpi slt, %47, %62 : vector<24x128xi32>
    %64 = arith.andi %53, %61 : vector<24x128xi1>
    %65 = arith.andi %49, %57 : vector<24x128xi1>
    %66 = arith.andi %53, %57 : vector<24x128xi1>
    %67 = arith.andi %49, %61 : vector<24x128xi1>
    %c0 = arith.constant 0 : index
    %c0_48 = arith.constant 0 : index
    %c0_49 = arith.constant 0 : index
    %68 = vector.load %arg4[%c0, %c0_48, %c0_49] : memref<3x24x128xf32, #tpu.memory_space<vmem>>, vector<1x24x128xf32>
    %69 = vector.shape_cast %68 : vector<1x24x128xf32> to vector<24x128xf32>
    %c1_i32_50 = arith.constant 1 : i32
    %70 = tpu.dynamic_rotate %69 by %c1_i32_50 dim 1 : vector<24x128xf32>, i32 -> vector<24x128xf32>
    %cst = arith.constant 0.000000e+00 : f32
    %71 = vector.broadcast %cst : f32 to vector<24x128xf32>
    %72 = arith.select %57, %70, %71 : vector<24x128xi1>, vector<24x128xf32>
    %c127_i32_51 = arith.constant 127 : i32
    %73 = tpu.dynamic_rotate %69 by %c127_i32_51 dim 1 : vector<24x128xf32>, i32 -> vector<24x128xf32>
    %cst_52 = arith.constant 0.000000e+00 : f32
    %74 = vector.broadcast %cst_52 : f32 to vector<24x128xf32>
    %75 = arith.select %61, %73, %74 : vector<24x128xi1>, vector<24x128xf32>
    %76 = arith.addf %72, %75 : vector<24x128xf32>
    %c2_i32_53 = arith.constant 2 : i32
    %77 = tpu.dynamic_rotate %69 by %c2_i32_53 dim 1 : vector<24x128xf32>, i32 -> vector<24x128xf32>
    %cst_54 = arith.constant 0.000000e+00 : f32
    %78 = vector.broadcast %cst_54 : f32 to vector<24x128xf32>
    %79 = arith.select %59, %77, %78 : vector<24x128xi1>, vector<24x128xf32>
    %c126_i32_55 = arith.constant 126 : i32
    %80 = tpu.dynamic_rotate %69 by %c126_i32_55 dim 1 : vector<24x128xf32>, i32 -> vector<24x128xf32>
    %cst_56 = arith.constant 0.000000e+00 : f32
    %81 = vector.broadcast %cst_56 : f32 to vector<24x128xf32>
    %82 = arith.select %63, %80, %81 : vector<24x128xi1>, vector<24x128xf32>
    %83 = arith.addf %79, %82 : vector<24x128xf32>
    %cst_57 = arith.constant 1.000000e+00 : f32
    %84 = vector.broadcast %cst_57 : f32 to vector<24x128xf32>
    %85 = arith.mulf %84, %69 : vector<24x128xf32>
    %cst_58 = arith.constant 0.606530666 : f32
    %86 = vector.broadcast %cst_58 : f32 to vector<24x128xf32>
    %87 = arith.mulf %86, %76 : vector<24x128xf32>
    %88 = arith.addf %85, %87 : vector<24x128xf32>
    %cst_59 = arith.constant 0.135335281 : f32
    %89 = vector.broadcast %cst_59 : f32 to vector<24x128xf32>
    %90 = arith.mulf %89, %83 : vector<24x128xf32>
    %91 = arith.addf %88, %90 : vector<24x128xf32>
    %c1_i32_60 = arith.constant 1 : i32
    %92 = tpu.dynamic_rotate %91 by %c1_i32_60 dim 0 : vector<24x128xf32>, i32 -> vector<24x128xf32>
    %cst_61 = arith.constant 0.000000e+00 : f32
    %93 = vector.broadcast %cst_61 : f32 to vector<24x128xf32>
    %94 = arith.select %49, %92, %93 : vector<24x128xi1>, vector<24x128xf32>
    %c23_i32 = arith.constant 23 : i32
    %95 = tpu.dynamic_rotate %91 by %c23_i32 dim 0 : vector<24x128xf32>, i32 -> vector<24x128xf32>
    %cst_62 = arith.constant 0.000000e+00 : f32
    %96 = vector.broadcast %cst_62 : f32 to vector<24x128xf32>
    %97 = arith.select %53, %95, %96 : vector<24x128xi1>, vector<24x128xf32>
    %98 = arith.addf %94, %97 : vector<24x128xf32>
    %c2_i32_63 = arith.constant 2 : i32
    %99 = tpu.dynamic_rotate %91 by %c2_i32_63 dim 0 : vector<24x128xf32>, i32 -> vector<24x128xf32>
    %cst_64 = arith.constant 0.000000e+00 : f32
    %100 = vector.broadcast %cst_64 : f32 to vector<24x128xf32>
    %101 = arith.select %51, %99, %100 : vector<24x128xi1>, vector<24x128xf32>
    %c22_i32 = arith.constant 22 : i32
    %102 = tpu.dynamic_rotate %91 by %c22_i32 dim 0 : vector<24x128xf32>, i32 -> vector<24x128xf32>
    %cst_65 = arith.constant 0.000000e+00 : f32
    %103 = vector.broadcast %cst_65 : f32 to vector<24x128xf32>
    %104 = arith.select %55, %102, %103 : vector<24x128xi1>, vector<24x128xf32>
    %105 = arith.addf %101, %104 : vector<24x128xf32>
    %cst_66 = arith.constant 1.000000e+00 : f32
    %106 = vector.broadcast %cst_66 : f32 to vector<24x128xf32>
    %107 = arith.mulf %106, %91 : vector<24x128xf32>
    %cst_67 = arith.constant 0.606530666 : f32
    %108 = vector.broadcast %cst_67 : f32 to vector<24x128xf32>
    %109 = arith.mulf %108, %98 : vector<24x128xf32>
    %110 = arith.addf %107, %109 : vector<24x128xf32>
    %cst_68 = arith.constant 0.135335281 : f32
    %111 = vector.broadcast %cst_68 : f32 to vector<24x128xf32>
    %112 = arith.mulf %111, %105 : vector<24x128xf32>
    %113 = arith.addf %110, %112 : vector<24x128xf32>
    %c1_i32_69 = arith.constant 1 : i32
    %114 = tpu.dynamic_rotate %113 by %c1_i32_69 dim 0 : vector<24x128xf32>, i32 -> vector<24x128xf32>
    %cst_70 = arith.constant 0.000000e+00 : f32
    %115 = vector.broadcast %cst_70 : f32 to vector<24x128xf32>
    %116 = arith.select %49, %114, %115 : vector<24x128xi1>, vector<24x128xf32>
    %cst_71 = arith.constant 2.000000e+00 : f32
    %117 = vector.broadcast %cst_71 : f32 to vector<24x128xf32>
    %118 = arith.mulf %117, %113 : vector<24x128xf32>
    %119 = arith.addf %116, %118 : vector<24x128xf32>
    %c23_i32_72 = arith.constant 23 : i32
    %120 = tpu.dynamic_rotate %113 by %c23_i32_72 dim 0 : vector<24x128xf32>, i32 -> vector<24x128xf32>
    %cst_73 = arith.constant 0.000000e+00 : f32
    %121 = vector.broadcast %cst_73 : f32 to vector<24x128xf32>
    %122 = arith.select %53, %120, %121 : vector<24x128xi1>, vector<24x128xf32>
    %123 = arith.addf %119, %122 : vector<24x128xf32>
    %c1_i32_74 = arith.constant 1 : i32
    %124 = tpu.dynamic_rotate %123 by %c1_i32_74 dim 1 : vector<24x128xf32>, i32 -> vector<24x128xf32>
    %cst_75 = arith.constant 0.000000e+00 : f32
    %125 = vector.broadcast %cst_75 : f32 to vector<24x128xf32>
    %126 = arith.select %57, %124, %125 : vector<24x128xi1>, vector<24x128xf32>
    %c127_i32_76 = arith.constant 127 : i32
    %127 = tpu.dynamic_rotate %123 by %c127_i32_76 dim 1 : vector<24x128xf32>, i32 -> vector<24x128xf32>
    %cst_77 = arith.constant 0.000000e+00 : f32
    %128 = vector.broadcast %cst_77 : f32 to vector<24x128xf32>
    %129 = arith.select %61, %127, %128 : vector<24x128xi1>, vector<24x128xf32>
    %130 = arith.subf %126, %129 : vector<24x128xf32>
    %c1_i32_78 = arith.constant 1 : i32
    %131 = tpu.dynamic_rotate %113 by %c1_i32_78 dim 1 : vector<24x128xf32>, i32 -> vector<24x128xf32>
    %cst_79 = arith.constant 0.000000e+00 : f32
    %132 = vector.broadcast %cst_79 : f32 to vector<24x128xf32>
    %133 = arith.select %57, %131, %132 : vector<24x128xi1>, vector<24x128xf32>
    %cst_80 = arith.constant 2.000000e+00 : f32
    %134 = vector.broadcast %cst_80 : f32 to vector<24x128xf32>
    %135 = arith.mulf %134, %113 : vector<24x128xf32>
    %136 = arith.addf %133, %135 : vector<24x128xf32>
    %c127_i32_81 = arith.constant 127 : i32
    %137 = tpu.dynamic_rotate %113 by %c127_i32_81 dim 1 : vector<24x128xf32>, i32 -> vector<24x128xf32>
    %cst_82 = arith.constant 0.000000e+00 : f32
    %138 = vector.broadcast %cst_82 : f32 to vector<24x128xf32>
    %139 = arith.select %61, %137, %138 : vector<24x128xi1>, vector<24x128xf32>
    %140 = arith.addf %136, %139 : vector<24x128xf32>
    %c1_i32_83 = arith.constant 1 : i32
    %141 = tpu.dynamic_rotate %140 by %c1_i32_83 dim 0 : vector<24x128xf32>, i32 -> vector<24x128xf32>
    %cst_84 = arith.constant 0.000000e+00 : f32
    %142 = vector.broadcast %cst_84 : f32 to vector<24x128xf32>
    %143 = arith.select %49, %141, %142 : vector<24x128xi1>, vector<24x128xf32>
    %c23_i32_85 = arith.constant 23 : i32
    %144 = tpu.dynamic_rotate %140 by %c23_i32_85 dim 0 : vector<24x128xf32>, i32 -> vector<24x128xf32>
    %cst_86 = arith.constant 0.000000e+00 : f32
    %145 = vector.broadcast %cst_86 : f32 to vector<24x128xf32>
    %146 = arith.select %53, %144, %145 : vector<24x128xi1>, vector<24x128xf32>
    %147 = arith.subf %143, %146 : vector<24x128xf32>
    %148 = arith.mulf %130, %130 : vector<24x128xf32>
    %149 = arith.mulf %147, %147 : vector<24x128xf32>
    %150 = arith.addf %148, %149 : vector<24x128xf32>
    %151 = math.sqrt %150 : vector<24x128xf32>
    %c1 = arith.constant 1 : index
    %c0_87 = arith.constant 0 : index
    %c0_88 = arith.constant 0 : index
    %152 = vector.load %arg4[%c1, %c0_87, %c0_88] : memref<3x24x128xf32, #tpu.memory_space<vmem>>, vector<1x24x128xf32>
    %153 = vector.shape_cast %152 : vector<1x24x128xf32> to vector<24x128xf32>
    %c1_i32_89 = arith.constant 1 : i32
    %154 = tpu.dynamic_rotate %153 by %c1_i32_89 dim 1 : vector<24x128xf32>, i32 -> vector<24x128xf32>
    %cst_90 = arith.constant 0.000000e+00 : f32
    %155 = vector.broadcast %cst_90 : f32 to vector<24x128xf32>
    %156 = arith.select %57, %154, %155 : vector<24x128xi1>, vector<24x128xf32>
    %c127_i32_91 = arith.constant 127 : i32
    %157 = tpu.dynamic_rotate %153 by %c127_i32_91 dim 1 : vector<24x128xf32>, i32 -> vector<24x128xf32>
    %cst_92 = arith.constant 0.000000e+00 : f32
    %158 = vector.broadcast %cst_92 : f32 to vector<24x128xf32>
    %159 = arith.select %61, %157, %158 : vector<24x128xi1>, vector<24x128xf32>
    %160 = arith.addf %156, %159 : vector<24x128xf32>
    %c2_i32_93 = arith.constant 2 : i32
    %161 = tpu.dynamic_rotate %153 by %c2_i32_93 dim 1 : vector<24x128xf32>, i32 -> vector<24x128xf32>
    %cst_94 = arith.constant 0.000000e+00 : f32
    %162 = vector.broadcast %cst_94 : f32 to vector<24x128xf32>
    %163 = arith.select %59, %161, %162 : vector<24x128xi1>, vector<24x128xf32>
    %c126_i32_95 = arith.constant 126 : i32
    %164 = tpu.dynamic_rotate %153 by %c126_i32_95 dim 1 : vector<24x128xf32>, i32 -> vector<24x128xf32>
    %cst_96 = arith.constant 0.000000e+00 : f32
    %165 = vector.broadcast %cst_96 : f32 to vector<24x128xf32>
    %166 = arith.select %63, %164, %165 : vector<24x128xi1>, vector<24x128xf32>
    %167 = arith.addf %163, %166 : vector<24x128xf32>
    %cst_97 = arith.constant 1.000000e+00 : f32
    %168 = vector.broadcast %cst_97 : f32 to vector<24x128xf32>
    %169 = arith.mulf %168, %153 : vector<24x128xf32>
    %cst_98 = arith.constant 0.606530666 : f32
    %170 = vector.broadcast %cst_98 : f32 to vector<24x128xf32>
    %171 = arith.mulf %170, %160 : vector<24x128xf32>
    %172 = arith.addf %169, %171 : vector<24x128xf32>
    %cst_99 = arith.constant 0.135335281 : f32
    %173 = vector.broadcast %cst_99 : f32 to vector<24x128xf32>
    %174 = arith.mulf %173, %167 : vector<24x128xf32>
    %175 = arith.addf %172, %174 : vector<24x128xf32>
    %c1_i32_100 = arith.constant 1 : i32
    %176 = tpu.dynamic_rotate %175 by %c1_i32_100 dim 0 : vector<24x128xf32>, i32 -> vector<24x128xf32>
    %cst_101 = arith.constant 0.000000e+00 : f32
    %177 = vector.broadcast %cst_101 : f32 to vector<24x128xf32>
    %178 = arith.select %49, %176, %177 : vector<24x128xi1>, vector<24x128xf32>
    %c23_i32_102 = arith.constant 23 : i32
    %179 = tpu.dynamic_rotate %175 by %c23_i32_102 dim 0 : vector<24x128xf32>, i32 -> vector<24x128xf32>
    %cst_103 = arith.constant 0.000000e+00 : f32
    %180 = vector.broadcast %cst_103 : f32 to vector<24x128xf32>
    %181 = arith.select %53, %179, %180 : vector<24x128xi1>, vector<24x128xf32>
    %182 = arith.addf %178, %181 : vector<24x128xf32>
    %c2_i32_104 = arith.constant 2 : i32
    %183 = tpu.dynamic_rotate %175 by %c2_i32_104 dim 0 : vector<24x128xf32>, i32 -> vector<24x128xf32>
    %cst_105 = arith.constant 0.000000e+00 : f32
    %184 = vector.broadcast %cst_105 : f32 to vector<24x128xf32>
    %185 = arith.select %51, %183, %184 : vector<24x128xi1>, vector<24x128xf32>
    %c22_i32_106 = arith.constant 22 : i32
    %186 = tpu.dynamic_rotate %175 by %c22_i32_106 dim 0 : vector<24x128xf32>, i32 -> vector<24x128xf32>
    %cst_107 = arith.constant 0.000000e+00 : f32
    %187 = vector.broadcast %cst_107 : f32 to vector<24x128xf32>
    %188 = arith.select %55, %186, %187 : vector<24x128xi1>, vector<24x128xf32>
    %189 = arith.addf %185, %188 : vector<24x128xf32>
    %cst_108 = arith.constant 1.000000e+00 : f32
    %190 = vector.broadcast %cst_108 : f32 to vector<24x128xf32>
    %191 = arith.mulf %190, %175 : vector<24x128xf32>
    %cst_109 = arith.constant 0.606530666 : f32
    %192 = vector.broadcast %cst_109 : f32 to vector<24x128xf32>
    %193 = arith.mulf %192, %182 : vector<24x128xf32>
    %194 = arith.addf %191, %193 : vector<24x128xf32>
    %cst_110 = arith.constant 0.135335281 : f32
    %195 = vector.broadcast %cst_110 : f32 to vector<24x128xf32>
    %196 = arith.mulf %195, %189 : vector<24x128xf32>
    %197 = arith.addf %194, %196 : vector<24x128xf32>
    %c1_i32_111 = arith.constant 1 : i32
    %198 = tpu.dynamic_rotate %197 by %c1_i32_111 dim 0 : vector<24x128xf32>, i32 -> vector<24x128xf32>
    %cst_112 = arith.constant 0.000000e+00 : f32
    %199 = vector.broadcast %cst_112 : f32 to vector<24x128xf32>
    %200 = arith.select %49, %198, %199 : vector<24x128xi1>, vector<24x128xf32>
    %cst_113 = arith.constant 2.000000e+00 : f32
    %201 = vector.broadcast %cst_113 : f32 to vector<24x128xf32>
    %202 = arith.mulf %201, %197 : vector<24x128xf32>
    %203 = arith.addf %200, %202 : vector<24x128xf32>
    %c23_i32_114 = arith.constant 23 : i32
    %204 = tpu.dynamic_rotate %197 by %c23_i32_114 dim 0 : vector<24x128xf32>, i32 -> vector<24x128xf32>
    %cst_115 = arith.constant 0.000000e+00 : f32
    %205 = vector.broadcast %cst_115 : f32 to vector<24x128xf32>
    %206 = arith.select %53, %204, %205 : vector<24x128xi1>, vector<24x128xf32>
    %207 = arith.addf %203, %206 : vector<24x128xf32>
    %c1_i32_116 = arith.constant 1 : i32
    %208 = tpu.dynamic_rotate %207 by %c1_i32_116 dim 1 : vector<24x128xf32>, i32 -> vector<24x128xf32>
    %cst_117 = arith.constant 0.000000e+00 : f32
    %209 = vector.broadcast %cst_117 : f32 to vector<24x128xf32>
    %210 = arith.select %57, %208, %209 : vector<24x128xi1>, vector<24x128xf32>
    %c127_i32_118 = arith.constant 127 : i32
    %211 = tpu.dynamic_rotate %207 by %c127_i32_118 dim 1 : vector<24x128xf32>, i32 -> vector<24x128xf32>
    %cst_119 = arith.constant 0.000000e+00 : f32
    %212 = vector.broadcast %cst_119 : f32 to vector<24x128xf32>
    %213 = arith.select %61, %211, %212 : vector<24x128xi1>, vector<24x128xf32>
    %214 = arith.subf %210, %213 : vector<24x128xf32>
    %c1_i32_120 = arith.constant 1 : i32
    %215 = tpu.dynamic_rotate %197 by %c1_i32_120 dim 1 : vector<24x128xf32>, i32 -> vector<24x128xf32>
    %cst_121 = arith.constant 0.000000e+00 : f32
    %216 = vector.broadcast %cst_121 : f32 to vector<24x128xf32>
    %217 = arith.select %57, %215, %216 : vector<24x128xi1>, vector<24x128xf32>
    %cst_122 = arith.constant 2.000000e+00 : f32
    %218 = vector.broadcast %cst_122 : f32 to vector<24x128xf32>
    %219 = arith.mulf %218, %197 : vector<24x128xf32>
    %220 = arith.addf %217, %219 : vector<24x128xf32>
    %c127_i32_123 = arith.constant 127 : i32
    %221 = tpu.dynamic_rotate %197 by %c127_i32_123 dim 1 : vector<24x128xf32>, i32 -> vector<24x128xf32>
    %cst_124 = arith.constant 0.000000e+00 : f32
    %222 = vector.broadcast %cst_124 : f32 to vector<24x128xf32>
    %223 = arith.select %61, %221, %222 : vector<24x128xi1>, vector<24x128xf32>
    %224 = arith.addf %220, %223 : vector<24x128xf32>
    %c1_i32_125 = arith.constant 1 : i32
    %225 = tpu.dynamic_rotate %224 by %c1_i32_125 dim 0 : vector<24x128xf32>, i32 -> vector<24x128xf32>
    %cst_126 = arith.constant 0.000000e+00 : f32
    %226 = vector.broadcast %cst_126 : f32 to vector<24x128xf32>
    %227 = arith.select %49, %225, %226 : vector<24x128xi1>, vector<24x128xf32>
    %c23_i32_127 = arith.constant 23 : i32
    %228 = tpu.dynamic_rotate %224 by %c23_i32_127 dim 0 : vector<24x128xf32>, i32 -> vector<24x128xf32>
    %cst_128 = arith.constant 0.000000e+00 : f32
    %229 = vector.broadcast %cst_128 : f32 to vector<24x128xf32>
    %230 = arith.select %53, %228, %229 : vector<24x128xi1>, vector<24x128xf32>
    %231 = arith.subf %227, %230 : vector<24x128xf32>
    %232 = arith.mulf %214, %214 : vector<24x128xf32>
    %233 = arith.mulf %231, %231 : vector<24x128xf32>
    %234 = arith.addf %232, %233 : vector<24x128xf32>
    %235 = math.sqrt %234 : vector<24x128xf32>
    %236 = arith.addf %151, %235 : vector<24x128xf32>
    %237 = arith.addf %130, %214 : vector<24x128xf32>
    %238 = arith.addf %147, %231 : vector<24x128xf32>
    %c2 = arith.constant 2 : index
    %c0_129 = arith.constant 0 : index
    %c0_130 = arith.constant 0 : index
    %239 = vector.load %arg4[%c2, %c0_129, %c0_130] : memref<3x24x128xf32, #tpu.memory_space<vmem>>, vector<1x24x128xf32>
    %240 = vector.shape_cast %239 : vector<1x24x128xf32> to vector<24x128xf32>
    %c1_i32_131 = arith.constant 1 : i32
    %241 = tpu.dynamic_rotate %240 by %c1_i32_131 dim 1 : vector<24x128xf32>, i32 -> vector<24x128xf32>
    %cst_132 = arith.constant 0.000000e+00 : f32
    %242 = vector.broadcast %cst_132 : f32 to vector<24x128xf32>
    %243 = arith.select %57, %241, %242 : vector<24x128xi1>, vector<24x128xf32>
    %c127_i32_133 = arith.constant 127 : i32
    %244 = tpu.dynamic_rotate %240 by %c127_i32_133 dim 1 : vector<24x128xf32>, i32 -> vector<24x128xf32>
    %cst_134 = arith.constant 0.000000e+00 : f32
    %245 = vector.broadcast %cst_134 : f32 to vector<24x128xf32>
    %246 = arith.select %61, %244, %245 : vector<24x128xi1>, vector<24x128xf32>
    %247 = arith.addf %243, %246 : vector<24x128xf32>
    %c2_i32_135 = arith.constant 2 : i32
    %248 = tpu.dynamic_rotate %240 by %c2_i32_135 dim 1 : vector<24x128xf32>, i32 -> vector<24x128xf32>
    %cst_136 = arith.constant 0.000000e+00 : f32
    %249 = vector.broadcast %cst_136 : f32 to vector<24x128xf32>
    %250 = arith.select %59, %248, %249 : vector<24x128xi1>, vector<24x128xf32>
    %c126_i32_137 = arith.constant 126 : i32
    %251 = tpu.dynamic_rotate %240 by %c126_i32_137 dim 1 : vector<24x128xf32>, i32 -> vector<24x128xf32>
    %cst_138 = arith.constant 0.000000e+00 : f32
    %252 = vector.broadcast %cst_138 : f32 to vector<24x128xf32>
    %253 = arith.select %63, %251, %252 : vector<24x128xi1>, vector<24x128xf32>
    %254 = arith.addf %250, %253 : vector<24x128xf32>
    %cst_139 = arith.constant 1.000000e+00 : f32
    %255 = vector.broadcast %cst_139 : f32 to vector<24x128xf32>
    %256 = arith.mulf %255, %240 : vector<24x128xf32>
    %cst_140 = arith.constant 0.606530666 : f32
    %257 = vector.broadcast %cst_140 : f32 to vector<24x128xf32>
    %258 = arith.mulf %257, %247 : vector<24x128xf32>
    %259 = arith.addf %256, %258 : vector<24x128xf32>
    %cst_141 = arith.constant 0.135335281 : f32
    %260 = vector.broadcast %cst_141 : f32 to vector<24x128xf32>
    %261 = arith.mulf %260, %254 : vector<24x128xf32>
    %262 = arith.addf %259, %261 : vector<24x128xf32>
    %c1_i32_142 = arith.constant 1 : i32
    %263 = tpu.dynamic_rotate %262 by %c1_i32_142 dim 0 : vector<24x128xf32>, i32 -> vector<24x128xf32>
    %cst_143 = arith.constant 0.000000e+00 : f32
    %264 = vector.broadcast %cst_143 : f32 to vector<24x128xf32>
    %265 = arith.select %49, %263, %264 : vector<24x128xi1>, vector<24x128xf32>
    %c23_i32_144 = arith.constant 23 : i32
    %266 = tpu.dynamic_rotate %262 by %c23_i32_144 dim 0 : vector<24x128xf32>, i32 -> vector<24x128xf32>
    %cst_145 = arith.constant 0.000000e+00 : f32
    %267 = vector.broadcast %cst_145 : f32 to vector<24x128xf32>
    %268 = arith.select %53, %266, %267 : vector<24x128xi1>, vector<24x128xf32>
    %269 = arith.addf %265, %268 : vector<24x128xf32>
    %c2_i32_146 = arith.constant 2 : i32
    %270 = tpu.dynamic_rotate %262 by %c2_i32_146 dim 0 : vector<24x128xf32>, i32 -> vector<24x128xf32>
    %cst_147 = arith.constant 0.000000e+00 : f32
    %271 = vector.broadcast %cst_147 : f32 to vector<24x128xf32>
    %272 = arith.select %51, %270, %271 : vector<24x128xi1>, vector<24x128xf32>
    %c22_i32_148 = arith.constant 22 : i32
    %273 = tpu.dynamic_rotate %262 by %c22_i32_148 dim 0 : vector<24x128xf32>, i32 -> vector<24x128xf32>
    %cst_149 = arith.constant 0.000000e+00 : f32
    %274 = vector.broadcast %cst_149 : f32 to vector<24x128xf32>
    %275 = arith.select %55, %273, %274 : vector<24x128xi1>, vector<24x128xf32>
    %276 = arith.addf %272, %275 : vector<24x128xf32>
    %cst_150 = arith.constant 1.000000e+00 : f32
    %277 = vector.broadcast %cst_150 : f32 to vector<24x128xf32>
    %278 = arith.mulf %277, %262 : vector<24x128xf32>
    %cst_151 = arith.constant 0.606530666 : f32
    %279 = vector.broadcast %cst_151 : f32 to vector<24x128xf32>
    %280 = arith.mulf %279, %269 : vector<24x128xf32>
    %281 = arith.addf %278, %280 : vector<24x128xf32>
    %cst_152 = arith.constant 0.135335281 : f32
    %282 = vector.broadcast %cst_152 : f32 to vector<24x128xf32>
    %283 = arith.mulf %282, %276 : vector<24x128xf32>
    %284 = arith.addf %281, %283 : vector<24x128xf32>
    %c1_i32_153 = arith.constant 1 : i32
    %285 = tpu.dynamic_rotate %284 by %c1_i32_153 dim 0 : vector<24x128xf32>, i32 -> vector<24x128xf32>
    %cst_154 = arith.constant 0.000000e+00 : f32
    %286 = vector.broadcast %cst_154 : f32 to vector<24x128xf32>
    %287 = arith.select %49, %285, %286 : vector<24x128xi1>, vector<24x128xf32>
    %cst_155 = arith.constant 2.000000e+00 : f32
    %288 = vector.broadcast %cst_155 : f32 to vector<24x128xf32>
    %289 = arith.mulf %288, %284 : vector<24x128xf32>
    %290 = arith.addf %287, %289 : vector<24x128xf32>
    %c23_i32_156 = arith.constant 23 : i32
    %291 = tpu.dynamic_rotate %284 by %c23_i32_156 dim 0 : vector<24x128xf32>, i32 -> vector<24x128xf32>
    %cst_157 = arith.constant 0.000000e+00 : f32
    %292 = vector.broadcast %cst_157 : f32 to vector<24x128xf32>
    %293 = arith.select %53, %291, %292 : vector<24x128xi1>, vector<24x128xf32>
    %294 = arith.addf %290, %293 : vector<24x128xf32>
    %c1_i32_158 = arith.constant 1 : i32
    %295 = tpu.dynamic_rotate %294 by %c1_i32_158 dim 1 : vector<24x128xf32>, i32 -> vector<24x128xf32>
    %cst_159 = arith.constant 0.000000e+00 : f32
    %296 = vector.broadcast %cst_159 : f32 to vector<24x128xf32>
    %297 = arith.select %57, %295, %296 : vector<24x128xi1>, vector<24x128xf32>
    %c127_i32_160 = arith.constant 127 : i32
    %298 = tpu.dynamic_rotate %294 by %c127_i32_160 dim 1 : vector<24x128xf32>, i32 -> vector<24x128xf32>
    %cst_161 = arith.constant 0.000000e+00 : f32
    %299 = vector.broadcast %cst_161 : f32 to vector<24x128xf32>
    %300 = arith.select %61, %298, %299 : vector<24x128xi1>, vector<24x128xf32>
    %301 = arith.subf %297, %300 : vector<24x128xf32>
    %c1_i32_162 = arith.constant 1 : i32
    %302 = tpu.dynamic_rotate %284 by %c1_i32_162 dim 1 : vector<24x128xf32>, i32 -> vector<24x128xf32>
    %cst_163 = arith.constant 0.000000e+00 : f32
    %303 = vector.broadcast %cst_163 : f32 to vector<24x128xf32>
    %304 = arith.select %57, %302, %303 : vector<24x128xi1>, vector<24x128xf32>
    %cst_164 = arith.constant 2.000000e+00 : f32
    %305 = vector.broadcast %cst_164 : f32 to vector<24x128xf32>
    %306 = arith.mulf %305, %284 : vector<24x128xf32>
    %307 = arith.addf %304, %306 : vector<24x128xf32>
    %c127_i32_165 = arith.constant 127 : i32
    %308 = tpu.dynamic_rotate %284 by %c127_i32_165 dim 1 : vector<24x128xf32>, i32 -> vector<24x128xf32>
    %cst_166 = arith.constant 0.000000e+00 : f32
    %309 = vector.broadcast %cst_166 : f32 to vector<24x128xf32>
    %310 = arith.select %61, %308, %309 : vector<24x128xi1>, vector<24x128xf32>
    %311 = arith.addf %307, %310 : vector<24x128xf32>
    %c1_i32_167 = arith.constant 1 : i32
    %312 = tpu.dynamic_rotate %311 by %c1_i32_167 dim 0 : vector<24x128xf32>, i32 -> vector<24x128xf32>
    %cst_168 = arith.constant 0.000000e+00 : f32
    %313 = vector.broadcast %cst_168 : f32 to vector<24x128xf32>
    %314 = arith.select %49, %312, %313 : vector<24x128xi1>, vector<24x128xf32>
    %c23_i32_169 = arith.constant 23 : i32
    %315 = tpu.dynamic_rotate %311 by %c23_i32_169 dim 0 : vector<24x128xf32>, i32 -> vector<24x128xf32>
    %cst_170 = arith.constant 0.000000e+00 : f32
    %316 = vector.broadcast %cst_170 : f32 to vector<24x128xf32>
    %317 = arith.select %53, %315, %316 : vector<24x128xi1>, vector<24x128xf32>
    %318 = arith.subf %314, %317 : vector<24x128xf32>
    %319 = arith.mulf %301, %301 : vector<24x128xf32>
    %320 = arith.mulf %318, %318 : vector<24x128xf32>
    %321 = arith.addf %319, %320 : vector<24x128xf32>
    %322 = math.sqrt %321 : vector<24x128xf32>
    %323 = arith.addf %236, %322 : vector<24x128xf32>
    %324 = arith.addf %237, %301 : vector<24x128xf32>
    %325 = arith.addf %238, %318 : vector<24x128xf32>
    %c127_i32_171 = arith.constant 127 : i32
    %326 = tpu.dynamic_rotate %323 by %c127_i32_171 dim 1 : vector<24x128xf32>, i32 -> vector<24x128xf32>
    %cst_172 = arith.constant 0.000000e+00 : f32
    %327 = vector.broadcast %cst_172 : f32 to vector<24x128xf32>
    %328 = arith.select %61, %326, %327 : vector<24x128xi1>, vector<24x128xf32>
    %329 = arith.subf %323, %328 : vector<24x128xf32>
    %c1_i32_173 = arith.constant 1 : i32
    %330 = tpu.dynamic_rotate %323 by %c1_i32_173 dim 1 : vector<24x128xf32>, i32 -> vector<24x128xf32>
    %cst_174 = arith.constant 0.000000e+00 : f32
    %331 = vector.broadcast %cst_174 : f32 to vector<24x128xf32>
    %332 = arith.select %57, %330, %331 : vector<24x128xi1>, vector<24x128xf32>
    %333 = arith.subf %323, %332 : vector<24x128xf32>
    %334 = arith.minimumf %329, %333 : vector<24x128xf32>
    %c23_i32_175 = arith.constant 23 : i32
    %335 = tpu.dynamic_rotate %323 by %c23_i32_175 dim 0 : vector<24x128xf32>, i32 -> vector<24x128xf32>
    %c1_i32_176 = arith.constant 1 : i32
    %336 = tpu.dynamic_rotate %323 by %c1_i32_176 dim 0 : vector<24x128xf32>, i32 -> vector<24x128xf32>
    %cst_177 = arith.constant 0.000000e+00 : f32
    %337 = vector.broadcast %cst_177 : f32 to vector<24x128xf32>
    %338 = arith.select %53, %335, %337 : vector<24x128xi1>, vector<24x128xf32>
    %339 = arith.subf %323, %338 : vector<24x128xf32>
    %cst_178 = arith.constant 0.000000e+00 : f32
    %340 = vector.broadcast %cst_178 : f32 to vector<24x128xf32>
    %341 = arith.select %49, %336, %340 : vector<24x128xi1>, vector<24x128xf32>
    %342 = arith.subf %323, %341 : vector<24x128xf32>
    %343 = arith.minimumf %339, %342 : vector<24x128xf32>
    %c127_i32_179 = arith.constant 127 : i32
    %344 = tpu.dynamic_rotate %335 by %c127_i32_179 dim 1 : vector<24x128xf32>, i32 -> vector<24x128xf32>
    %cst_180 = arith.constant 0.000000e+00 : f32
    %345 = vector.broadcast %cst_180 : f32 to vector<24x128xf32>
    %346 = arith.select %64, %344, %345 : vector<24x128xi1>, vector<24x128xf32>
    %347 = arith.subf %323, %346 : vector<24x128xf32>
    %c1_i32_181 = arith.constant 1 : i32
    %348 = tpu.dynamic_rotate %336 by %c1_i32_181 dim 1 : vector<24x128xf32>, i32 -> vector<24x128xf32>
    %cst_182 = arith.constant 0.000000e+00 : f32
    %349 = vector.broadcast %cst_182 : f32 to vector<24x128xf32>
    %350 = arith.select %65, %348, %349 : vector<24x128xi1>, vector<24x128xf32>
    %351 = arith.subf %323, %350 : vector<24x128xf32>
    %352 = arith.minimumf %347, %351 : vector<24x128xf32>
    %c1_i32_183 = arith.constant 1 : i32
    %353 = tpu.dynamic_rotate %335 by %c1_i32_183 dim 1 : vector<24x128xf32>, i32 -> vector<24x128xf32>
    %cst_184 = arith.constant 0.000000e+00 : f32
    %354 = vector.broadcast %cst_184 : f32 to vector<24x128xf32>
    %355 = arith.select %66, %353, %354 : vector<24x128xi1>, vector<24x128xf32>
    %356 = arith.subf %323, %355 : vector<24x128xf32>
    %c127_i32_185 = arith.constant 127 : i32
    %357 = tpu.dynamic_rotate %336 by %c127_i32_185 dim 1 : vector<24x128xf32>, i32 -> vector<24x128xf32>
    %cst_186 = arith.constant 0.000000e+00 : f32
    %358 = vector.broadcast %cst_186 : f32 to vector<24x128xf32>
    %359 = arith.select %67, %357, %358 : vector<24x128xi1>, vector<24x128xf32>
    %360 = arith.subf %323, %359 : vector<24x128xf32>
    %361 = arith.minimumf %356, %360 : vector<24x128xf32>
    %362 = math.absf %324 : vector<24x128xf32>
    %363 = math.absf %325 : vector<24x128xf32>
    %cst_187 = arith.constant 0.414213181 : f32
    %364 = vector.broadcast %cst_187 : f32 to vector<24x128xf32>
    %365 = arith.mulf %364, %362 : vector<24x128xf32>
    %366 = arith.cmpf ole, %363, %365 : vector<24x128xf32>
    %cst_188 = arith.constant 2.41420674 : f32
    %367 = vector.broadcast %cst_188 : f32 to vector<24x128xf32>
    %368 = arith.mulf %367, %362 : vector<24x128xf32>
    %369 = arith.cmpf oge, %363, %368 : vector<24x128xf32>
    %370 = arith.mulf %324, %325 : vector<24x128xf32>
    %cst_189 = arith.constant 0.000000e+00 : f32
    %371 = vector.broadcast %cst_189 : f32 to vector<24x128xf32>
    %372 = arith.cmpf ogt, %370, %371 : vector<24x128xf32>
    %373 = arith.select %372, %352, %361 : vector<24x128xi1>, vector<24x128xf32>
    %374 = arith.select %369, %343, %373 : vector<24x128xi1>, vector<24x128xf32>
    %375 = arith.select %366, %334, %374 : vector<24x128xi1>, vector<24x128xf32>
    %cst_190 = arith.constant 0.000000e+00 : f32
    %376 = vector.broadcast %cst_190 : f32 to vector<24x128xf32>
    %377 = arith.cmpf ogt, %375, %376 : vector<24x128xf32>
    %cst_191 = arith.constant 1.000000e+01 : f32
    %378 = vector.broadcast %cst_191 : f32 to vector<24x128xf32>
    %379 = arith.cmpf oge, %323, %378 : vector<24x128xf32>
    %380 = arith.andi %377, %379 : vector<24x128xi1>
    %381 = vector.extract_strided_slice %380 {offsets = [8, 0], sizes = [8, 128], strides = [1, 1]} : vector<24x128xi1> to vector<8x128xi1>
    %382 = arith.extui %381 : vector<8x128xi1> to vector<8x128xi32>
    %383 = arith.sitofp %382 : vector<8x128xi32> to vector<8x128xf32>
    %c0_192 = arith.constant 0 : index
    %c0_193 = arith.constant 0 : index
    %c0_194 = arith.constant 0 : index
    %c0_195 = arith.constant 0 : index
    %384 = vector.load %arg3[%c0_192, %c0_193, %c0_194, %c0_195] : memref<1x1x8x128xf32, #tpu.memory_space<vmem>>, vector<1x1x8x128xf32>
    %385 = vector.shape_cast %384 : vector<1x1x8x128xf32> to vector<8x128xf32>
    %386 = vector.shape_cast %383 : vector<8x128xf32> to vector<1x1x8x128xf32>
    tpu.vector_store %arg3[%c0_192, %c0_193, %c0_194, %c0_195], %386 {strides = array<i32>} : memref<1x1x8x128xf32, #tpu.memory_space<vmem>>, vector<1x1x8x128xf32>,
    return
  }
  func.func @transform_1(%arg0: i32, %arg1: i32) -> (i32, i32, i32, i32) {
    %c0_i32 = arith.constant 0 : i32
    %c0_i32_0 = arith.constant 0 : i32
    %c0_i32_1 = arith.constant 0 : i32
    return %arg0, %c0_i32, %arg1, %c0_i32_0 : i32, i32, i32, i32
  }
}

</mosaic_0001>

<bundles_post_ra>
// kernel: tpu_custom_call.1
= control target key start
LH: loop header
LB: loop body
LE: loop exit
PB: predicated region body
PF: predicated region fallthrough
CT: control target
= control target key end

     0   :  { %6 = vsyncpa [#allocation5], 0  ;;  %s3047_s0 = inlined_call_operand.hbm [shape: f32[1,3,16,128], index: 0, kind: input, shape index: {}]   ;;  %s3048_s1 = inlined_call_operand.hbm [shape: f32[1,1,16,128], index: 1, kind: output, shape index: {}]  }
   0x1   :  { %8 = vsyncpa [#allocation5 + $0x1], 0  ;;  %s1715_s6 = smov 0   ;;  %s1717_s7 = smov 0  }
   0x2   :  { %s1719_s8 = smov 0   ;;  %s1721_s9 = smov 0  }
   0x3 LB: > { %s20_s10 = sadd.s32 1, %s1684_s8  ;;  %s1219_s11 = sadd.s32 4294967295, %s1688_s9   ;;  %s1688_s9 = sphi %s1721_s9, %s14_s9   ;;  %s1684_s8 = sphi %s1719_s8, %s3132_s8   ;;  %s1680_s7 = sphi %s1717_s7, %s3134_s7   ;;  %s1676_s6 = sphi %s1715_s6, %s3133_s6  }
   0x4   : > { %p21_p0 = scmp.ge.s32.totalorder %s20_s10, 2  ;;  %p41_p1 = scmp.ne.s32.totalorder %s1680_s7, %s1676_s6 }
   0x5   : > { %s32_s12 = sadd.s32 1, %s1680_s7  ;;  %p42_p2 = scmp.eq.s32.totalorder %s1219_s11, 1 }
   0x6   : > { %s3136_s10 = smov (%p21_p0, %s20_s10), 0  ;;  %p36_p3 = scmp.eq.s32.totalorder %s1688_s9, 1 }
   0x7   : > { %3061 = sst [smem:[#allocation36_spill]] %s3136_s10  ;;  %s28_s13 = ssub.s32 %s1684_s8, %s3136_s10 }
   0x8   : > { %p30_p4 = scmp.eq.s32.totalorder %s28_s13, 0  ;;  %p1220_p5 = scmp.ne.s32.totalorder %s28_s13, 0 }
   0x9   : > { %p1745_p6 = por %p42_p2, %p41_p1  ;;  %p1221_p8 = scmp.ge.s32.totalorder %s1688_s9, 2 }
   0xa   : > { %s1750_s15 = scalar_select %p30_p4, %s1680_s7, %s32_s12  }
   0xb   : > { %s3062_s14 = scalar_select %p1745_p6, 1, 0 }
   0xc   : > { %p1752_p7 = por %p1220_p5, %p36_p3  ;;  %51 = sbr.rel (%p1221_p8) target bundleno = 781 (0x30d), region = 12 }
   0xd   : > { %s3050_s17 = sand.u32 (!%p1221_p8), 1, %s1680_s7   ;;  %s3051_s18 = sshll.u32 (!%p1221_p8), %s1684_s8, 7 }
   0xe   : > { %s3063_s16 = scalar_select %p1752_p7, 1, 0 }
   0xf   : > { %s1761_s19 = sshll.u32 (!%p1221_p8), %s3050_s17, 3  ;;  %s1768_s22 = scalar_lea.hbm (!%p1221_p8), %s3047_s0, %s3051_s18 }
  0x10   : > { %s1690_s23 = smov (!%p1221_p8), [#allocation2 + $0x8]   ;;  %s1771_s25 = scalar_lea.hbm (!%p1221_p8), %s1768_s22, 256 }
  0x11   : > { %s72_s24 = sshll.u32 (!%p1221_p8), %s1690_s23, 4  ;;  %s1774_s26 = scalar_lea.hbm (!%p1221_p8), %s1768_s22, 128  ;;  %s73_s24 = int_to_ptr.vmem [resolvable:$true] %s72_s24 }
  0x12   : > { %p1350_p9 = scmp.ne.s32.totalorder (!%p1221_p8), %s1768_s22, %s1774_s26  ;;  %s1781_s29 = scalar_lea.hbm (!%p1221_p8), %s3047_s0, 768 }
  0x13   : > { %p1352_p10 = scmp.lt.u32.totalorder %s1768_s22, %s3047_s0  ;;  %p1353_p11 = scmp.lt.u32.totalorder %s1781_s29, %s1774_s26 }
  0x14   : > { %p1355_p13 = scmp.lt.u32.totalorder %s1774_s26, %s1768_s22 }
  0x15   : > { %p1354_p12 = por %p1353_p11, %p1352_p10 }
  0x17   : > { %p1356_p0 = por %p1355_p13, %p1354_p12 }
  0x19   : > { %p1357_p1 = pnand %p1356_p0, %p1350_p9 }
  0x1b   : > { %1360 = shalt.err (!%p1357_p1)  }
  0x1c   : > { %s1361_s3 = scalar_lea.vmem %s73_s24, 128  ;;  %s1691_s4 = smov [#allocation2]  }
  0x1d   : > { %p1362_p2 = scmp.ne.s32.totalorder %s73_s24, %s1361_s3  ;;  %s1363_s5 = sshll.u32 %s1691_s4, 4  ;;  %s1791_s5 = int_to_ptr.vmem [resolvable:$false] %s1363_s5 }
  0x1e   : > { %s1794_s11 = scalar_lea.vmem %s1791_s5, 1152  ;;  %p1366_p3 = scmp.lt.s32.totalorder %s73_s24, %s1791_s5 }
  0x1f   : > { %p1367_p4 = scmp.lt.s32.totalorder %s1794_s11, %s1361_s3 }
  0x21   : > { %p1368_p5 = por %p1367_p4, %p1366_p3 }
  0x23   : > { %p1369_p8 = pnand %p1368_p5, %p1362_p2 }
  0x25   : > { %1372 = shalt.err (!%p1369_p8)  }
  0x26   : > { %75 = dma.hbm_to_vmem [thread:$0]  %s1768_s22, 128, %s73_s24, [#allocation3] }
  0x27   : > { %s1692_s12 = smov [#allocation2 + $0x20]   ;;  %s1800_s20 = scalar_lea.hbm %s1768_s22, 512 }
  0x28   : > { %s89_s13 = sshll.u32 %s1692_s12, 4  ;;  %s1803_s21 = scalar_lea.hbm %s1768_s22, 384  ;;  %s90_s13 = int_to_ptr.vmem [resolvable:$true] %s89_s13 }
  0x29   : > { %p1374_p9 = scmp.ne.s32.totalorder %s1771_s25, %s1803_s21  ;;  %p1376_p10 = scmp.lt.u32.totalorder %s1771_s25, %s3047_s0 }
  0x2a   : > { %p1377_p11 = scmp.lt.u32.totalorder %s1781_s29, %s1803_s21  ;;  %p1379_p13 = scmp.lt.u32.totalorder %s1803_s21, %s1771_s25 }
  0x2c   : > { %p1378_p12 = por %p1377_p11, %p1376_p10 }
  0x2e   : > { %p1380_p0 = por %p1379_p13, %p1378_p12 }
  0x30   : > { %p1381_p1 = pnand %p1380_p0, %p1374_p9 }
  0x32   : > { %1384 = shalt.err (!%p1381_p1)  }
  0x33   : > { %s1385_s24 = scalar_lea.vmem %s90_s13, 128  ;;  %p1390_p3 = scmp.lt.s32.totalorder %s90_s13, %s1791_s5 }
  0x34   : > { %p1386_p2 = scmp.ne.s32.totalorder %s90_s13, %s1385_s24  ;;  %p1391_p4 = scmp.lt.s32.totalorder %s1794_s11, %s1385_s24 }
  0x36   : > { %p1392_p5 = por %p1391_p4, %p1390_p3 }
  0x38   : > { %p1393_p8 = pnand %p1392_p5, %p1386_p2 }
  0x3a   : > { %1396 = shalt.err (!%p1393_p8)  }
  0x3b   : > { %92 = dma.hbm_to_vmem [thread:$0]  %s1771_s25, 128, %s90_s13, [#allocation3 + $0x1] }
  0x3c   : > { %s1693_s28 = smov [#allocation2 + $0x38]   ;;  %s1223_s2 = sshll.u32 %s1684_s8, 3 }
  0x3d   : > { %s106_s30 = sshll.u32 %s1693_s28, 4  ;;  %s1820_s3 = scalar_lea.hbm %s1768_s22, 640  ;;  %s107_s30 = int_to_ptr.vmem [resolvable:$true] %s106_s30 }
  0x3e   : > { %p1399_p9 = scmp.ne.s32.totalorder %s1800_s20, %s1820_s3  ;;  %p1401_p10 = scmp.lt.u32.totalorder %s1800_s20, %s3047_s0 }
  0x3f   : > { %p1402_p11 = scmp.lt.u32.totalorder %s1781_s29, %s1820_s3  ;;  %p1404_p13 = scmp.lt.u32.totalorder %s1820_s3, %s1800_s20 }
  0x41   : > { %p1403_p12 = por %p1402_p11, %p1401_p10 }
  0x43   : > { %p1405_p0 = por %p1404_p13, %p1403_p12 }
  0x45   : > { %p1406_p1 = pnand %p1405_p0, %p1399_p9 }
  0x47   : > { %1409 = shalt.err (!%p1406_p1)  }
  0x48   : > { %s1410_s13 = scalar_lea.vmem %s107_s30, 128  ;;  %p1415_p3 = scmp.lt.s32.totalorder %s107_s30, %s1791_s5 }
  0x49   : > { %p1411_p2 = scmp.ne.s32.totalorder %s107_s30, %s1410_s13  ;;  %p1416_p4 = scmp.lt.s32.totalorder %s1794_s11, %s1410_s13 }
  0x4b   : > { %p1417_p5 = por %p1416_p4, %p1415_p3 }
  0x4d   : > { %p1418_p8 = pnand %p1417_p5, %p1411_p2 }
  0x4f   : > { %1421 = shalt.err (!%p1418_p8)  }
  0x50   : > { %109 = dma.hbm_to_vmem [thread:$0]  %s1800_s20, 128, %s107_s30, [#allocation3 + $0x2] }
  0x51   : > { %p1282_p6 = scmp.gt.s32.totalorder %s1684_s8, 0  ;;  %s1836_s23 = sadd.s32 4294967288, %s1223_s2 }
  0x52   : > { %s1231_s27 = sshll.u32 %s1836_s23, 4 }
  0x53   : > { %s1842_s4 = scalar_lea.hbm %s3047_s0, %s1231_s27 }
  0x54   : > { %s1845_s12 = scalar_lea.hbm %s1842_s4, 256  ;;  %s1423_s13 = scalar_lea.hbm %s1842_s4, 128 }
  0x55   : > { %p1424_p9 = scmp.ne.s32.totalorder %s1842_s4, %s1423_s13  ;;  %p1428_p12 = scmp.lt.u32.totalorder %s1842_s4, %s3047_s0 }
  0x56   : > { %p1429_p13 = scmp.lt.u32.totalorder %s1781_s29, %s1423_s13  ;;  %p1431_p1 = scmp.lt.u32.totalorder %s1423_s13, %s1842_s4 }
  0x57   : > { %p1425_p10 = pnand %p1424_p9, %p1282_p6 }
  0x58   : > { %p1430_p0 = por %p1429_p13, %p1428_p12 }
  0x59   : > { %p1426_p11 = pneg %p1425_p10 }
  0x5a   : > { %p1432_p2 = por %p1431_p1, %p1430_p0 }
  0x5c   : > { %p1433_p3 = pnand %p1432_p2, %p1426_p11 }
  0x5e   : > { %1436 = shalt.err (!%p1433_p3)  }
  0x5f   : > { %s1437_s27 = scalar_lea.vmem %s1791_s5, 128  ;;  %p1444_p9 = scmp.lt.s32.totalorder %s1791_s5, %s1791_s5 }
  0x60   : > { %p1438_p4 = scmp.ne.s32.totalorder %s1791_s5, %s1437_s27  ;;  %p1445_p10 = scmp.lt.s32.totalorder %s1794_s11, %s1437_s27 }
  0x62   : > { %p1439_p5 = pnand %p1438_p4, %p1282_p6  ;;  %p1446_p7 = por %p1445_p10, %p1444_p9 }
  0x64   : > { %p1440_p8 = pneg %p1439_p5 }
  0x66   : > { %p1447_p12 = pnand %p1446_p7, %p1440_p8 }
  0x68   : > { %1450 = shalt.err (!%p1447_p12)  }
  0x69   : > { %1263 = dma.hbm_to_vmem [thread:$0]  (%p1282_p6), %s1842_s4, 128, %s1791_s5, [#allocation3 + $0x3] }
  0x6a   : > { %s1869_s24 = scalar_lea.hbm %s1842_s4, 512  ;;  %s1694_s28 = smov [#allocation2 + $0x18]  }
  0x6b   : > { %s143_s13 = sshll.u32 %s1694_s28, 4  ;;  %s1695_s30 = smov [#allocation2 + $0x30]   ;;  %s144_s13 = int_to_ptr.vmem [resolvable:$true] %s143_s13 }
  0x6c   : > { %s160_s2 = sshll.u32 %s1695_s30, 4  ;;  %s1479_s27 = scalar_lea.hbm %s1842_s4, 384  ;;  %s161_s2 = int_to_ptr.vmem [resolvable:$true] %s160_s2 }
  0x6d   : > { %p1452_p7 = scmp.ne.s32.totalorder %s1845_s12, %s1479_s27  ;;  %p1456_p0 = scmp.lt.u32.totalorder %s1845_s12, %s3047_s0 }
  0x6e   : > { %p1457_p1 = scmp.lt.u32.totalorder %s1781_s29, %s1479_s27  ;;  %p1459_p3 = scmp.lt.u32.totalorder %s1479_s27, %s1845_s12 }
  0x6f   : > { %p1453_p11 = pnand %p1452_p7, %p1282_p6 }
  0x70   : > { %p1458_p2 = por %p1457_p1, %p1456_p0 }
  0x71   : > { %p1454_p13 = pneg %p1453_p11 }
  0x72   : > { %p1460_p4 = por %p1459_p3, %p1458_p2 }
  0x74   : > { %p1461_p5 = pnand %p1460_p4, %p1454_p13 }
  0x76   : > { %1464 = shalt.err (!%p1461_p5)  }
  0x77   : > { %s1465_s10 = scalar_lea.vmem %s144_s13, 128  ;;  %p1472_p12 = scmp.lt.s32.totalorder %s144_s13, %s1791_s5 }
  0x78   : > { %p1466_p8 = scmp.ne.s32.totalorder %s144_s13, %s1465_s10  ;;  %p1473_p7 = scmp.lt.s32.totalorder %s1794_s11, %s1465_s10 }
  0x7a   : > { %p1467_p9 = pnand %p1466_p8, %p1282_p6  ;;  %p1474_p11 = por %p1473_p7, %p1472_p12 }
  0x7c   : > { %p1468_p10 = pneg %p1467_p9 }
  0x7e   : > { %p1475_p0 = pnand %p1474_p11, %p1468_p10 }
  0x80   : > { %1478 = shalt.err (!%p1475_p0)  }
  0x81   : > { %1264 = dma.hbm_to_vmem [thread:$0]  (%p1282_p6), %s1845_s12, 128, %s144_s13, [#allocation3 + $0x4] }
  0x82   : > { %s1508_s17 = scalar_lea.hbm %s1842_s4, 640  ;;  %p1485_p3 = scmp.lt.u32.totalorder %s1869_s24, %s3047_s0 }
  0x83   : > { %p1481_p13 = scmp.ne.s32.totalorder %s1869_s24, %s1508_s17  ;;  %p1486_p4 = scmp.lt.u32.totalorder %s1781_s29, %s1508_s17 }
  0x84   : > { %p1488_p8 = scmp.lt.u32.totalorder %s1508_s17, %s1869_s24 }
  0x85   : > { %p1482_p1 = pnand %p1481_p13, %p1282_p6  ;;  %p1487_p5 = por %p1486_p4, %p1485_p3 }
  0x87   : > { %p1483_p2 = pneg %p1482_p1  ;;  %p1489_p9 = por %p1488_p8, %p1487_p5 }
  0x89   : > { %p1490_p10 = pnand %p1489_p9, %p1483_p2 }
  0x8b   : > { %1493 = shalt.err (!%p1490_p10)  }
  0x8c   : > { %s1494_s28 = scalar_lea.vmem %s161_s2, 128  ;;  %p1501_p0 = scmp.lt.s32.totalorder %s161_s2, %s1791_s5 }
  0x8d   : > { %p1495_p12 = scmp.ne.s32.totalorder %s161_s2, %s1494_s28  ;;  %p1502_p13 = scmp.lt.s32.totalorder %s1794_s11, %s1494_s28 }
  0x8f   : > { %p1496_p7 = pnand %p1495_p12, %p1282_p6  ;;  %p1503_p1 = por %p1502_p13, %p1501_p0 }
  0x91   : > { %p1497_p11 = pneg %p1496_p7 }
  0x93   : > { %p1504_p3 = pnand %p1503_p1, %p1497_p11 }
  0x95   : > { %1507 = shalt.err (!%p1504_p3)  }
  0x96   : > { %1265 = dma.hbm_to_vmem [thread:$0]  (%p1282_p6), %s1869_s24, 128, %s161_s2, [#allocation3 + $0x5] }
  0x97   : > { %s58_s4 = scalar_lea.vmem [#allocation4], %s1761_s19 }
  0x98   : > { %1641 = dma.done.wait (%p1282_p6), [#allocation3 + $0x3], 128 }
  0x99   : > { %1643 = vsyncadd (%p1282_p6), [#allocation3 + $0x3], 4294967168 }
  0x9a   : > { %1645 = dma.done.wait (%p1282_p6), [#allocation3 + $0x4], 128 }
  0x9b   : > { %1647 = vsyncadd (%p1282_p6), [#allocation3 + $0x4], 4294967168 }
  0x9c   : > { %1649 = dma.done.wait (%p1282_p6), [#allocation3 + $0x5], 128 }
  0x9d   : > { %1651 = vsyncadd (%p1282_p6), [#allocation3 + $0x5], 4294967168  ;;  %p1283_p2 = scmp.lt.s32.totalorder %s1684_s8, 1  ;;  %s1696_s12 = smov [#allocation2 + $0x10]  }
  0x9e   : > { %s188_s24 = sshll.u32 %s1696_s12, 4  ;;  %p1510_p4 = scmp.ne.s32.totalorder %s1774_s26, %s1771_s25  ;;  %s189_s24 = int_to_ptr.vmem [resolvable:$true] %s188_s24 }
  0x9f   : > { %p1514_p6 = scmp.lt.u32.totalorder %s1774_s26, %s3047_s0  ;;  %p1515_p9 = scmp.lt.u32.totalorder %s1781_s29, %s1771_s25 }
  0xa0   : > { %p1511_p5 = pnand %p1510_p4, %p1283_p2  ;;  %p1517_p12 = scmp.lt.u32.totalorder %s1771_s25, %s1774_s26 }
  0xa1   : > { %p1516_p10 = por %p1515_p9, %p1514_p6 }
  0xa2   : > { %p1512_p8 = pneg %p1511_p5 }
  0xa3   : > { %p1518_p7 = por %p1517_p12, %p1516_p10 }
  0xa5   : > { %p1519_p11 = pnand %p1518_p7, %p1512_p8 }
  0xa7   : > { %1522 = shalt.err (!%p1519_p11)  }
  0xa8   : > { %s1523_s2 = scalar_lea.vmem %s189_s24, 128  ;;  %p1530_p3 = scmp.lt.s32.totalorder %s189_s24, %s1791_s5 }
  0xa9   : > { %p1524_p0 = scmp.ne.s32.totalorder %s189_s24, %s1523_s2  ;;  %p1531_p4 = scmp.lt.s32.totalorder %s1794_s11, %s1523_s2 }
  0xab   : > { %p1525_p13 = pnand %p1524_p0, %p1283_p2  ;;  %p1532_p5 = por %p1531_p4, %p1530_p3 }
  0xad   : > { %p1526_p1 = pneg %p1525_p13 }
  0xaf   : > { %p1533_p6 = pnand %p1532_p5, %p1526_p1 }
  0xb1   : > { %1536 = shalt.err (!%p1533_p6)  }
  0xb2   : > { %1270 = dma.hbm_to_vmem [thread:$0]  (%p1283_p2), %s1774_s26, 128, %s189_s24, [#allocation3 + $0x6] }
  0xb3   : > { %s1697_s25 = smov [#allocation2 + $0x28]   ;;  %p1539_p8 = scmp.ne.s32.totalorder %s1803_s21, %s1800_s20 }
  0xb4   : > { %s205_s27 = sshll.u32 %s1697_s25, 4  ;;  %p1543_p12 = scmp.lt.u32.totalorder %s1803_s21, %s3047_s0  ;;  %s206_s27 = int_to_ptr.vmem [resolvable:$true] %s205_s27 }
  0xb5   : > { %p1540_p9 = pnand %p1539_p8, %p1283_p2  ;;  %p1544_p7 = scmp.lt.u32.totalorder %s1781_s29, %s1800_s20 }
  0xb6   : > { %p1546_p0 = scmp.lt.u32.totalorder %s1800_s20, %s1803_s21 }
  0xb7   : > { %p1541_p10 = pneg %p1540_p9  ;;  %p1545_p11 = por %p1544_p7, %p1543_p12 }
  0xb9   : > { %p1547_p13 = por %p1546_p0, %p1545_p11 }
  0xbb   : > { %p1548_p1 = pnand %p1547_p13, %p1541_p10 }
  0xbd   : > { %1551 = shalt.err (!%p1548_p1)  }
  0xbe   : > { %s1552_s18 = scalar_lea.vmem %s206_s27, 128  ;;  %p1559_p6 = scmp.lt.s32.totalorder %s206_s27, %s1791_s5 }
  0xbf   : > { %p1553_p3 = scmp.ne.s32.totalorder %s206_s27, %s1552_s18  ;;  %p1560_p8 = scmp.lt.s32.totalorder %s1794_s11, %s1552_s18 }
  0xc1   : > { %p1554_p4 = pnand %p1553_p3, %p1283_p2  ;;  %p1561_p9 = por %p1560_p8, %p1559_p6 }
  0xc3   : > { %p1555_p5 = pneg %p1554_p4 }
  0xc5   : > { %p1562_p7 = pnand %p1561_p9, %p1555_p5 }
  0xc7   : > { %1565 = shalt.err (!%p1562_p7)  }
  0xc8   : > { %1271 = dma.hbm_to_vmem [thread:$0]  (%p1283_p2), %s1803_s21, 128, %s206_s27, [#allocation3 + $0x7] }
  0xc9   : > { %s1698_s26 = smov [#allocation2 + $0x40]   ;;  %s1595_s28 = scalar_lea.hbm %s1768_s22, 768 }
  0xca   : > { %s222_s20 = sshll.u32 %s1698_s26, 4  ;;  %p1568_p10 = scmp.ne.s32.totalorder %s1820_s3, %s1595_s28  ;;  %s223_s20 = int_to_ptr.vmem [resolvable:$true] %s222_s20 }
  0xcb   : > { %p1572_p0 = scmp.lt.u32.totalorder %s1820_s3, %s3047_s0  ;;  %p1573_p13 = scmp.lt.u32.totalorder %s1781_s29, %s1595_s28 }
  0xcc   : > { %p1569_p12 = pnand %p1568_p10, %p1283_p2  ;;  %p1575_p3 = scmp.lt.u32.totalorder %s1595_s28, %s1820_s3 }
  0xcd   : > { %p1574_p1 = por %p1573_p13, %p1572_p0 }
  0xce   : > { %p1570_p11 = pneg %p1569_p12 }
  0xcf   : > { %p1576_p4 = por %p1575_p3, %p1574_p1 }
  0xd1   : > { %p1577_p5 = pnand %p1576_p4, %p1570_p11 }
  0xd3   : > { %1580 = shalt.err (!%p1577_p5)  }
  0xd4   : > { %s1581_s13 = scalar_lea.vmem %s223_s20, 128  ;;  %p1588_p7 = scmp.lt.s32.totalorder %s223_s20, %s1791_s5 }
  0xd5   : > { %p1582_p6 = scmp.ne.s32.totalorder %s223_s20, %s1581_s13  ;;  %p1589_p10 = scmp.lt.s32.totalorder %s1794_s11, %s1581_s13 }
  0xd7   : > { %p1583_p8 = pnand %p1582_p6, %p1283_p2  ;;  %p1590_p12 = por %p1589_p10, %p1588_p7 }
  0xd9   : > { %p1584_p9 = pneg %p1583_p8 }
  0xdb   : > { %p1591_p0 = pnand %p1590_p12, %p1584_p9 }
  0xdd   : > { %1594 = shalt.err (!%p1591_p0)  }
  0xde   : > { %1272 = dma.hbm_to_vmem [thread:$0]  (%p1283_p2), %s1820_s3, 128, %s223_s20, [#allocation3 + $0x8] }
  0xdf   : > { %1653 = dma.done.wait (%p1283_p2), [#allocation3 + $0x6], 128 }
  0xe0   : > { %1655 = vsyncadd (%p1283_p2), [#allocation3 + $0x6], 4294967168 }
  0xe1   : > { %1657 = dma.done.wait (%p1283_p2), [#allocation3 + $0x7], 128 }
  0xe2   : > { %1659 = vsyncadd (%p1283_p2), [#allocation3 + $0x7], 4294967168 }
  0xe3   : > { %1661 = dma.done.wait (%p1283_p2), [#allocation3 + $0x8], 128 }
  0xe4   : > { %1663 = vsyncadd (%p1283_p2), [#allocation3 + $0x8], 4294967168 }
  0xe5   : > { %1664 = dma.done.wait [#allocation3], 128 }
  0xe6   : > { %1665 = vsyncadd [#allocation3], 4294967168 }
  0xe7   : > { %1666 = dma.done.wait [#allocation3 + $0x1], 128 }
  0xe8   : > { %1667 = vsyncadd [#allocation3 + $0x1], 4294967168 }
  0xe9   : > { %1668 = dma.done.wait [#allocation3 + $0x2], 128 }
  0xea   : > { %1669 = vsyncadd [#allocation3 + $0x2], 4294967168  ;;  %v1986_v0 = vld [vmem:[#allocation2 + $0x10] sm:$0xff]  ;;  %v1988_v1 = vld [vmem:[#allocation2] sm:$0xff]  ;;  %s1699_s22 = smov 1   ;;  %s1700_s29 = smov 127   ;;  %v241_v15 = vlaneseq  ;;  %v245_v33 = vstv %s1836_s23 }
  0xeb   : > { %278 = vrot.lane.b32.xlu1 %v1986_v0, %s1699_s22  ;;  %274 = vrot.lane.b32.xlu0 %v1988_v1, %s1699_s22  ;;  %v1994_v2 = vld [vmem:[#allocation2 + $0x8] sm:$0xff]  ;;  %v2004_v3 = vld [vmem:[#allocation2 + $0x20] sm:$0xff]  ;;  %v2006_v4 = vld [vmem:[#allocation2 + $0x18] sm:$0xff]  ;;  %s1701_s5 = smov 2   ;;  %s1702_s11 = smov 126  }
  0xec   : > { %v2012_v5 = vld [vmem:[#allocation2 + $0x28] sm:$0xff]  ;;  %v2034_v6 = vld [vmem:[#allocation2 + $0x38] sm:$0xff]  ;;  %v2036_v7 = vld [vmem:[#allocation2 + $0x30] sm:$0xff]  ;;  %v2058_v18 = vand.u32 127, %v241_v15  ;;  %v2070_v30 = vshrl.u32 %v241_v15, 7  ;;  %s1060_s21 = sshll.u32 %s58_s4, 4  ;;  %s3004_s21 = int_to_ptr.vmem [resolvable:$true] %s1060_s21 }
  0xed   : > { %v2042_v8 = vld [vmem:[#allocation2 + $0x40] sm:$0xff]  ;;  %s3128_s3 = sshll.u32 %s1684_s8, 7  ;;  %s3129_s25 = sand.u32 1, %s1680_s7  }
  0xee   : > { %vm3057_vm0 = vcmp.lt.s32.totalorder %v2058_v18, 127  ;;  %vm3058_vm1 = vcmp.ge.s32.totalorder %v2058_v18, 1  ;;  %vm264_vm2 = vcmp.ge.s32.totalorder %v2058_v18, 2  ;;  %vm3054_vm3 = vcmp.lt.s32.totalorder %v2058_v18, 126  ;;  %s3002_s2 = scalar_lea.hbm %s3048_s1, %s3128_s3  ;;  %s1045_s27 = scalar_lea.sflag [#allocation5], %s3129_s25 }
  0xef   : > { %283 = vrot.lane.b32.xlu1 %v1988_v1, %s1700_s29  ;;  %276 = vrot.lane.b32.xlu0 %v1994_v2, %s1699_s22  ;;  %v2088_v43 = vadd.s32 %v245_v33, %v2070_v30  ;;  %v243_v46 = vadd.s32 8, %v2070_v30  ;;  %v244_v47 = vadd.s32 16, %v2070_v30  ;;  %vm331_vm4 = vcmp.lt.s32.totalorder %v2070_v30, 1  ;;  %s1596_s17 = scalar_lea.vmem %s3004_s21, 128  ;;  %p3130_p11 = scmp.ne.s32.totalorder %s3063_s16, 0 }
  0xf0   : > { %vm341_vm5 = vcmp.lt.s32.totalorder %v2070_v30, 7  ;;  %vm354_vm6 = vcmp.lt.s32.totalorder %v2070_v30, 2  ;;  %vm364_vm7 = vcmp.lt.s32.totalorder %v2070_v30, 6  ;;  %p1597_p2 = scmp.ne.s32.totalorder %s3004_s21, %s1596_s17  ;;  %s1704_s8 = smov [#allocation4]  }
  0xf1   : > { %vm3059_vm8 = vcmp.ge.s32.totalorder %v2088_v43, 1  ;;  %vm3053_vm9 = vcmp.ge.s32.totalorder %v2088_v43, 2  ;;  %vm3055_vm10 = vcmp.lt.s32.totalorder %v2088_v43, 15  ;;  %vm3056_vm11 = vcmp.lt.s32.totalorder %v2088_v43, 14  ;;  %s1600_s10 = sshll.u32 %s1704_s8, 4  ;;  %s1601_s10 = int_to_ptr.vmem [resolvable:$false] %s1600_s10 }
  0xf2   : > { %p1598_p13 = pnand %p1597_p2, %p3130_p11  ;;  %s1602_s18 = scalar_lea.vmem %s1601_s10, 256 }
  0xf3   : > { %287 = vrot.lane.b32.xlu1 %v1986_v0, %s1700_s29  ;;  %285 = vrot.lane.b32.xlu0 %v1994_v2, %s1700_s29  ;;  %p1603_p3 = scmp.lt.s32.totalorder %s3004_s21, %s1601_s10  ;;  %p1604_p4 = scmp.lt.s32.totalorder %s1602_s18, %s1596_s17 }
  0xf4   : > { %p1599_p1 = pneg %p1598_p13 }
  0xf5   : > { %p1605_p5 = por %p1604_p4, %p1603_p3 }
  0xf7   : > { %515 = vrot.lane.b32.xlu1 %v2004_v3, %s1699_s22  ;;  %513 = vrot.lane.b32.xlu0 %v2006_v4, %s1699_s22  ;;  %p1606_p6 = pnand %p1605_p5, %p1599_p1 }
  0xfb   : > { %522 = vrot.lane.b32.xlu1 %v2006_v4, %s1700_s29  ;;  %517 = vrot.lane.b32.xlu0 %v2012_v5, %s1699_s22 }
  0xff   : > { %526 = vrot.lane.b32.xlu1 %v2012_v5, %s1700_s29  ;;  %524 = vrot.lane.b32.xlu0 %v2004_v3, %s1700_s29 }
 0x103   : > { %297 = vrot.lane.b32.xlu1 %v1994_v2, %s1701_s5  ;;  %295 = vrot.lane.b32.xlu0 %v1988_v1, %s1701_s5 }
 0x107   : > { %304 = vrot.lane.b32.xlu1 %v1988_v1, %s1702_s11  ;;  %299 = vrot.lane.b32.xlu0 %v1986_v0, %s1701_s5 }
 0x10b   : > { %308 = vrot.lane.b32.xlu1 %v1986_v0, %s1702_s11  ;;  %306 = vrot.lane.b32.xlu0 %v1994_v2, %s1702_s11 }
 0x10f   : > { %536 = vrot.lane.b32.xlu1 %v2004_v3, %s1701_s5  ;;  %534 = vrot.lane.b32.xlu0 %v2006_v4, %s1701_s5 }
 0x113   : > { %543 = vrot.lane.b32.xlu1 %v2006_v4, %s1702_s11  ;;  %538 = vrot.lane.b32.xlu0 %v2012_v5, %s1701_s5 }
 0x117   : > { %547 = vrot.lane.b32.xlu1 %v2012_v5, %s1702_s11  ;;  %545 = vrot.lane.b32.xlu0 %v2004_v3, %s1702_s11 }
 0x11b   : > { %755 = vrot.lane.b32.xlu1 %v2034_v6, %s1699_s22  ;;  %753 = vrot.lane.b32.xlu0 %v2036_v7, %s1699_s22 }
 0x11f   : > { %762 = vrot.lane.b32.xlu1 %v2036_v7, %s1700_s29  ;;  %757 = vrot.lane.b32.xlu0 %v2042_v8, %s1699_s22 }
 0x123   : > { %766 = vrot.lane.b32.xlu1 %v2042_v8, %s1700_s29  ;;  %764 = vrot.lane.b32.xlu0 %v2034_v6, %s1700_s29 }
 0x127   : > { %776 = vrot.lane.b32.xlu1 %v2034_v6, %s1701_s5  ;;  %774 = vrot.lane.b32.xlu0 %v2036_v7, %s1701_s5 }
 0x12b   : > { %783 = vrot.lane.b32.xlu1 %v2036_v7, %s1702_s11  ;;  %778 = vrot.lane.b32.xlu0 %v2042_v8, %s1701_s5 }
 0x12f   : > { %787 = vrot.lane.b32.xlu1 %v2042_v8, %s1702_s11  ;;  %785 = vrot.lane.b32.xlu0 %v2034_v6, %s1702_s11 }
 0x15d   : > { %v279_v9 = vpop.permute.xlu1 %278  ;;  %v275_v10 = vpop.permute.xlu0 %274 }
 0x15e   : > { %v280_v24 = vsel %vm3058_vm1, %v275_v10, 0.0  ;;  %v282_v31 = vsel %vm3058_vm1, %v279_v9, 0.0 }
 0x161   : > { %v284_v11 = vpop.permute.xlu1 %283  ;;  %v277_v12 = vpop.permute.xlu0 %276 }
 0x162   : > { %v289_v21 = vsel %vm3057_vm0, %v284_v11, 0.0  ;;  %v281_v32 = vsel %vm3058_vm1, %v277_v12, 0.0 }
 0x163   : > { %v292_v25 = vadd.f32 %v289_v21, %v280_v24 }
 0x165   : > { %v288_v13 = vpop.permute.xlu1 %287  ;;  %v286_v14 = vpop.permute.xlu0 %285  ;;  %v316_v34 = vmul.f32 0.60653067, %v292_v25 }
 0x166   : > { %v291_v26 = vsel %vm3057_vm0, %v288_v13, 0.0  ;;  %v290_v27 = vsel %vm3057_vm0, %v286_v14, 0.0  ;;  %v2118_v14 = vadd.s32 %v245_v33, %v243_v46 }
 0x167   : > { %v294_v35 = vadd.f32 %v291_v26, %v282_v31  ;;  %v293_v36 = vadd.f32 %v290_v27, %v281_v32  ;;  %v319_v48 = vadd.f32 %v316_v34, %v1988_v1 }
 0x168   : > { %vm252_vm12 = vcmp.ge.s32.totalorder %v2118_v14, 1  ;;  %vm258_vm13 = vcmp.lt.s32.totalorder %v2118_v14, 15  ;;  %vm255_vm14 = vcmp.ge.s32.totalorder %v2118_v14, 2  ;;  %vm261_vm15 = vcmp.lt.s32.totalorder %v2118_v14, 14 }
 0x169   : > { %v516_v16 = vpop.permute.xlu1 %515  ;;  %v514_v17 = vpop.permute.xlu0 %513  ;;  %v318_v49 = vmul.f32 0.60653067, %v294_v35  ;;  %v317_v50 = vmul.f32 0.60653067, %v293_v36 }
 0x16a   : > { %v519_v40 = vsel %vm3058_vm1, %v514_v17, 0.0  ;;  %v520_v52 = vsel %vm3058_vm1, %v516_v16, 0.0 }
 0x16b   : > { %v321_v15 = vadd.f32 %v318_v49, %v1986_v0  ;;  %v320_v16 = vadd.f32 %v317_v50, %v1994_v2 }
 0x16d   : > { %v523_v19 = vpop.permute.xlu1 %522  ;;  %v518_v20 = vpop.permute.xlu0 %517 }
 0x16e   : > { %v528_v37 = vsel %vm3057_vm0, %v523_v19, 0.0  ;;  %v521_v53 = vsel %vm3058_vm1, %v518_v20, 0.0 }
 0x16f   : > { %v531_v44 = vadd.f32 %v528_v37, %v519_v40 }
 0x171   : > { %v527_v22 = vpop.permute.xlu1 %526  ;;  %v525_v23 = vpop.permute.xlu0 %524  ;;  %v555_v62 = vmul.f32 0.60653067, %v531_v44 }
 0x172   : > { %v530_v51 = vsel %vm3057_vm0, %v527_v22, 0.0  ;;  %v529_v54 = vsel %vm3057_vm0, %v525_v23, 0.0  ;;  %v2124_v22 = vadd.s32 %v245_v33, %v244_v47 }
 0x173   : > { %v533_v63 = vadd.f32 %v530_v51, %v521_v53  ;;  %v532_v10 = vadd.f32 %v529_v54, %v520_v52  ;;  %v558_v20 = vadd.f32 %v555_v62, %v2006_v4 }
 0x175   : > { %v298_v28 = vpop.permute.xlu1 %297  ;;  %v296_v29 = vpop.permute.xlu0 %295  ;;  %v557_v21 = vmul.f32 0.60653067, %v533_v63  ;;  %v556_v23 = vmul.f32 0.60653067, %v532_v10 }
 0x176   : > { %v301_v41 = vsel %vm264_vm2, %v296_v29, 0.0  ;;  %v302_v58 = vsel %vm264_vm2, %v298_v28, 0.0 }
 0x177   : > { %v560_v10 = vadd.f32 %v557_v21, %v2012_v5 }
 0x179   : > { %v305_v38 = vpop.permute.xlu1 %304  ;;  %v300_v39 = vpop.permute.xlu0 %299 }
 0x17a   : > { %v310_v42 = vsel %vm3054_vm3, %v305_v38, 0.0  ;;  %v303_v59 = vsel %vm264_vm2, %v300_v39, 0.0 }
 0x17b   : > { %v313_v45 = vadd.f32 %v310_v42, %v301_v41 }
 0x17d   : > { %v322_v55 = vmul.f32 0.13533528, %v313_v45  ;;  %v309_v56 = vpop.permute.xlu1 %308  ;;  %v307_v57 = vpop.permute.xlu0 %306 }
 0x17e   : > { %v312_v60 = vsel %vm3054_vm3, %v309_v56, 0.0  ;;  %v311_v61 = vsel %vm3054_vm3, %v307_v57, 0.0 }
 0x17f   : > { %v315_v1 = vadd.f32 %v312_v60, %v303_v59  ;;  %v314_v9 = vadd.f32 %v311_v61, %v302_v58  ;;  %v2111_v11 = vadd.f32 %v322_v55, %v319_v48 }
 0x181   : > { %v537_v12 = vpop.permute.xlu1 %536  ;;  %v535_v13 = vpop.permute.xlu0 %534  ;;  %v324_v17 = vmul.f32 0.13533528, %v315_v1  ;;  %v323_v19 = vmul.f32 0.13533528, %v314_v9  ;;  %v328_v24 = vrot.slane %v2111_v11, 7  ;;  %v338_v0 = vrot.slane %v2111_v11, 1 }
 0x182   : > { %v351_v2 = vrot.slane %v2111_v11, 6  ;;  %v361_v27 = vrot.slane %v2111_v11, 2  ;;  %v541_v4 = vsel %vm264_vm2, %v537_v12, 0.0  ;;  %v540_v34 = vsel %vm264_vm2, %v535_v13, 0.0 }
 0x183   : > { %v2127_v25 = vadd.f32 %v324_v17, %v321_v15  ;;  %v2129_v26 = vadd.f32 %v323_v19, %v320_v16  ;;  %v559_v16 = vadd.f32 %v556_v23, %v2004_v3 }
 0x185   : > { %v544_v28 = vpop.permute.xlu1 %543  ;;  %v539_v29 = vpop.permute.xlu0 %538  ;;  %v330_v31 = vrot.slane %v2127_v25, 7  ;;  %v340_v32 = vrot.slane %v2127_v25, 1  ;;  %v353_v33 = vrot.slane %v2127_v25, 6  ;;  %v329_v35 = vrot.slane %v2129_v26, 7 }
 0x186   : > { %v339_v36 = vrot.slane %v2129_v26, 1  ;;  %v352_v37 = vrot.slane %v2129_v26, 6  ;;  %v362_v38 = vrot.slane %v2129_v26, 2  ;;  %v549_v39 = vsel %vm3054_vm3, %v544_v28, 0.0 }
 0x187   : > { %v542_v40 = vsel %vm264_vm2, %v539_v29, 0.0  ;;  %v334_v41 = vsel %vm331_vm4, %v330_v31, %v328_v24  ;;  %v357_v42 = vsel %vm354_vm6, %v353_v33, %v351_v2  ;;  %v552_v44 = vadd.f32 %v549_v39, %v540_v34 }
 0x188   : > { %v335_v47 = vsel %vm3059_vm8, %v334_v41, 0.0  ;;  %v343_v48 = vsel %vm341_vm5, %v338_v0, %v339_v36  ;;  %v358_v49 = vsel %vm3053_vm9, %v357_v42, 0.0  ;;  %v366_v53 = vsel %vm364_vm7, %v361_v27, %v362_v38 }
 0x189   : > { %v548_v45 = vpop.permute.xlu1 %547  ;;  %v546_v46 = vpop.permute.xlu0 %545  ;;  %v345_v52 = vsel %vm3055_vm10, %v343_v48, 0.0  ;;  %v561_v54 = vmul.f32 0.13533528, %v552_v44  ;;  %v363_v58 = vrot.slane %v2127_v25, 2  ;;  %v368_v59 = vsel %vm3056_vm11, %v366_v53, 0.0 }
 0x18a   : > { %v551_v50 = vsel %vm3054_vm3, %v548_v45, 0.0  ;;  %v550_v51 = vsel %vm3054_vm3, %v546_v46, 0.0  ;;  %v348_v57 = vadd.f32 %v345_v52, %v335_v47  ;;  %vm253_vm9 = vcmp.ge.s32.totalorder %v2124_v22, 1 }
 0x18b   : > { %v554_v55 = vadd.f32 %v551_v50, %v542_v40  ;;  %v553_v56 = vadd.f32 %v550_v51, %v541_v4  ;;  %vm259_vm3 = vcmp.lt.s32.totalorder %v2124_v22, 15  ;;  %v2184_v60 = vadd.f32 %v561_v54, %v558_v20 }
 0x18c   : > { %v333_v9 = vsel %vm331_vm4, %v328_v24, %v329_v35  ;;  %vm256_vm10 = vcmp.ge.s32.totalorder %v2124_v22, 2  ;;  %v371_v12 = vadd.f32 %v368_v59, %v358_v49  ;;  %v374_v13 = vmul.f32 0.60653067, %v348_v57 }
 0x18d   : > { %v563_v61 = vmul.f32 0.13533528, %v554_v55  ;;  %v562_v62 = vmul.f32 0.13533528, %v553_v56  ;;  %v756_v63 = vpop.permute.xlu1 %755  ;;  %v754_v1 = vpop.permute.xlu0 %753  ;;  %v342_v15 = vsel %vm341_vm5, %v339_v36, %v340_v32  ;;  %vm3060_vm11 = vcmp.lt.s32.totalorder %v2124_v22, 14 }
 0x18e   : > { %v760_v17 = vsel %vm3058_vm1, %v756_v63, 0.0  ;;  %v759_v19 = vsel %vm3058_vm1, %v754_v1, 0.0  ;;  %v356_v5 = vsel %vm354_vm6, %v351_v2, %v352_v37  ;;  %v567_v20 = vrot.slane %v2184_v60, 7 }
 0x18f   : > { %v2205_v21 = vadd.f32 %v563_v61, %v560_v10  ;;  %v377_v24 = vadd.f32 %v374_v13, %v2111_v11  ;;  %v336_v3 = vsel %vm252_vm12, %v333_v9, 0.0  ;;  %v576_v23 = vrot.slane %v2184_v60, 1 }
 0x190   : > { %v2211_v4 = vadd.f32 %v562_v62, %v559_v16  ;;  %v346_v29 = vsel %vm258_vm13, %v342_v15, 0.0  ;;  %v365_v2 = vsel %vm364_vm7, %v362_v38, %v363_v58  ;;  %v588_v36 = vrot.slane %v2184_v60, 6 }
 0x191   : > { %v763_v28 = vpop.permute.xlu1 %762  ;;  %v758_v34 = vpop.permute.xlu0 %757  ;;  %v380_v39 = vmul.f32 0.13533528, %v371_v12  ;;  %v359_v40 = vsel %vm255_vm14, %v356_v5, 0.0  ;;  %v332_v41 = vsel %vm331_vm4, %v329_v35, %v330_v31  ;;  %v597_v42 = vrot.slane %v2184_v60, 2 }
 0x192   : > { %v569_v44 = vrot.slane %v2205_v21, 7  ;;  %v578_v45 = vrot.slane %v2205_v21, 1  ;;  %v590_v38 = vrot.slane %v2205_v21, 6  ;;  %v768_v46 = vsel %vm3057_vm0, %v763_v28, 0.0 }
 0x193   : > { %v2230_v47 = vadd.f32 %v380_v39, %v377_v24  ;;  %v349_v48 = vadd.f32 %v346_v29, %v336_v3  ;;  %v369_v49 = vsel %vm261_vm15, %v365_v2, 0.0  ;;  %v568_v50 = vrot.slane %v2211_v4, 7 }
 0x194   : > { %v372_v31 = vadd.f32 %v369_v49, %v359_v40  ;;  %v761_v35 = vsel %vm3058_vm1, %v758_v34, 0.0  ;;  %v337_v52 = vsel %vm253_vm9, %v332_v41, 0.0  ;;  %v344_v56 = vsel %vm341_vm5, %v340_v32, %v338_v0 }
 0x195   : > { %v767_v51 = vpop.permute.xlu1 %766  ;;  %v765_v53 = vpop.permute.xlu0 %764  ;;  %434 = vrot.lane.b32.xlu0 %v2230_v47, %s1699_s22  ;;  %v375_v54 = vmul.f32 0.60653067, %v349_v48  ;;  %v355_v57 = vsel %vm354_vm6, %v352_v37, %v353_v33  ;;  %v771_v59 = vadd.f32 %v768_v46, %v759_v19  ;;  %v347_v63 = vsel %vm259_vm3, %v344_v56, 0.0 }
 0x196   : > { %v770_v55 = vsel %vm3057_vm0, %v767_v51, 0.0  ;;  %v381_v61 = vmul.f32 0.13533528, %v372_v31  ;;  %v350_v9 = vadd.f32 %v347_v63, %v337_v52  ;;  %v360_v10 = vsel %vm256_vm10, %v355_v57, 0.0 }
 0x197   : > { %v773_v62 = vadd.f32 %v770_v55, %v761_v35  ;;  %v378_v1 = vadd.f32 %v375_v54, %v2129_v26  ;;  %v367_v0 = vsel %vm364_vm7, %v363_v58, %v361_v27  ;;  %v577_v32 = vrot.slane %v2211_v4, 1 }
 0x198   : > { %v598_v33 = vrot.slane %v2211_v4, 2  ;;  %v370_v37 = vsel %vm3060_vm11, %v367_v0, 0.0  ;;  %v769_v12 = vsel %vm3057_vm0, %v765_v53, 0.0  ;;  %v599_v13 = vrot.slane %v2205_v21, 2 }
 0x199   : > { %v2270_v26 = vpop.permute.xlu1 %776  ;;  %v2273_v15 = vadd.f32 %v381_v61, %v378_v1  ;;  %v373_v11 = vadd.f32 %v370_v37, %v360_v10  ;;  %v376_v16 = vmul.f32 0.60653067, %v350_v9  ;;  %v775_v19 = vpop.permute.xlu0 %774  ;;  %v589_v27 = vrot.slane %v2211_v4, 6 }
 0x19a   : > { %v795_v58 = vmul.f32 0.60653067, %v771_v59  ;;  %v797_v5 = vmul.f32 0.60653067, %v773_v62  ;;  %v572_v24 = vsel %vm331_vm4, %v569_v44, %v567_v20  ;;  %v772_v29 = vadd.f32 %v769_v12, %v760_v17 }
 0x19b   : > { %436 = vrot.lane.b32.xlu1 %v2273_v15, %s1699_s22  ;;  %v379_v3 = vadd.f32 %v376_v16, %v2127_v25  ;;  %v382_v28 = vmul.f32 0.13533528, %v373_v11  ;;  %v573_v2 = vsel %vm3059_vm8, %v572_v24, 0.0  ;;  %v580_v39 = vsel %vm341_vm5, %v576_v23, %v577_v32 }
 0x19c   : > { %v593_v40 = vsel %vm354_vm6, %v590_v38, %v588_v36  ;;  %v601_v25 = vsel %vm364_vm7, %v597_v42, %v598_v33  ;;  %v571_v17 = vsel %vm331_vm4, %v567_v20, %v568_v50  ;;  %v780_v46 = vsel %vm264_vm2, %v775_v19, 0.0 }
 0x19d   : > { %v784_v34 = vpop.permute.xlu1 %783  ;;  %v2307_v41 = vadd.f32 %v382_v28, %v379_v3  ;;  %vm3064_vm0 = vcmp.lt.s32.totalorder %v2058_v18, 126  ;;  %vm3065_vm1 = vcmp.lt.s32.totalorder %v2088_v43, 15  ;;  %vm3066_vm8 = vcmp.ge.s32.totalorder %v2088_v43, 2  ;;  %v779_v56 = vpop.permute.xlu0 %778 }
 0x19e   : > { %v789_v48 = vsel %vm3064_vm0, %v784_v34, 0.0  ;;  %v582_v49 = vsel %vm3065_vm1, %v580_v39, 0.0  ;;  %v594_v51 = vsel %vm3066_vm8, %v593_v40, 0.0  ;;  %vm3067_vm11 = vcmp.lt.s32.totalorder %v2088_v43, 14  ;;  %vm3069_vm8 = vmmov %vm3064_vm0 }
 0x19f   : > { %v792_v31 = vadd.f32 %v789_v48, %v780_v46  ;;  %v585_v35 = vadd.f32 %v582_v49, %v573_v2  ;;  %v603_v52 = vsel %vm3067_vm11, %v601_v25, 0.0  ;;  %438 = vrot.lane.b32.xlu0 %v2307_v41, %s1699_s22  ;;  %v574_v53 = vsel %vm252_vm12, %v571_v17, 0.0 }
 0x1a0   : > { %v606_v20 = vadd.f32 %v603_v52, %v594_v51  ;;  %v579_v54 = vsel %vm341_vm5, %v577_v32, %v578_v45  ;;  %v592_v55 = vsel %vm354_vm6, %v588_v36, %v589_v27  ;;  %v798_v1 = vadd.f32 %v795_v58, %v2036_v7 }
 0x1a1   : > { %v801_v57 = vmul.f32 0.13533528, %v792_v31  ;;  %v609_v59 = vmul.f32 0.60653067, %v585_v35  ;;  %v583_v61 = vsel %vm258_vm13, %v579_v54, 0.0  ;;  %v595_v62 = vsel %vm255_vm14, %v592_v55, 0.0  ;;  %v788_v63 = vpop.permute.xlu1 %787  ;;  %v786_v39 = vpop.permute.xlu0 %785 }
 0x1a2   : > { %v615_v9 = vmul.f32 0.13533528, %v606_v20  ;;  %v586_v10 = vadd.f32 %v583_v61, %v574_v53  ;;  %v600_v0 = vsel %vm364_vm7, %v598_v33, %v599_v13  ;;  %v782_v37 = vsel %vm264_vm2, %v779_v56, 0.0 }
 0x1a3   : > { %v612_v32 = vadd.f32 %v609_v59, %v2184_v60  ;;  %v604_v36 = vsel %vm261_vm15, %v600_v0, 0.0  ;;  %v791_v12 = vsel %vm3064_vm0, %v788_v63, 0.0  ;;  %v570_v7 = vsel %vm331_vm4, %v568_v50, %v569_v44 }
 0x1a4   : > { %v607_v11 = vadd.f32 %v604_v36, %v595_v62  ;;  %v610_v16 = vmul.f32 0.60653067, %v586_v10  ;;  %v794_v19 = vadd.f32 %v791_v12, %v782_v37  ;;  %v800_v33 = vadd.f32 %v797_v5, %v2042_v8 }
 0x1a5   : > { %v796_v58 = vmul.f32 0.60653067, %v772_v29  ;;  %v2352_v24 = vadd.f32 %v801_v57, %v798_v1  ;;  %v2354_v3 = vadd.f32 %v615_v9, %v612_v32  ;;  %v575_v40 = vsel %vm253_vm9, %v570_v7, 0.0 }
 0x1a6   : > { %v613_v28 = vadd.f32 %v610_v16, %v2211_v4  ;;  %v616_v2 = vmul.f32 0.13533528, %v607_v11  ;;  %v803_v34 = vmul.f32 0.13533528, %v794_v19  ;;  %v581_v8 = vsel %vm341_vm5, %v578_v45, %v576_v23 }
 0x1a7   : > { %v591_v44 = vsel %vm354_vm6, %v589_v27, %v590_v38  ;;  %v602_v4 = vsel %vm364_vm7, %v599_v13, %v597_v42  ;;  %669 = vrot.lane.b32.xlu1 %v2354_v3, %s1699_s22  ;;  %v584_v23 = vsel %vm259_vm3, %v581_v8, 0.0  ;;  %vm3068_vm1 = vcmp.lt.s32.totalorder %v2124_v22, 14 }
 0x1a8   : > { %v2375_v50 = vadd.f32 %v616_v2, %v613_v28  ;;  %v2377_v5 = vadd.f32 %v803_v34, %v800_v33  ;;  %v596_v45 = vsel %vm256_vm10, %v591_v44, 0.0  ;;  %v587_v29 = vadd.f32 %v584_v23, %v575_v40  ;;  %vm3072_vm0 = vmmov %vm3068_vm1 }
 0x1a9   : > { %v605_v60 = vsel %vm3068_vm1, %v602_v4, 0.0  ;;  %v790_v42 = vsel %vm3069_vm8, %v786_v39, 0.0  ;;  %v781_v38 = vsel %vm264_vm2, %v2270_v26, 0.0  ;;  %v799_v31 = vadd.f32 %v796_v58, %v2034_v6 }
 0x1aa   : > { %671 = vrot.lane.b32.xlu0 %v2375_v50, %s1699_s22  ;;  %v809_v13 = vrot.slane %v2377_v5, 7  ;;  %v818_v27 = vrot.slane %v2377_v5, 1  ;;  %v830_v25 = vrot.slane %v2377_v5, 6  ;;  %v839_v17 = vrot.slane %v2377_v5, 2 }
 0x1ab   : > { %v608_v46 = vadd.f32 %v605_v60, %v596_v45  ;;  %v611_v48 = vmul.f32 0.60653067, %v587_v29  ;;  %v793_v49 = vadd.f32 %v790_v42, %v781_v38  ;;  %v807_v35 = vrot.slane %v2352_v24, 7 }
 0x1ac   : > { %v816_v26 = vrot.slane %v2352_v24, 1  ;;  %v828_v51 = vrot.slane %v2352_v24, 6  ;;  %v837_v52 = vrot.slane %v2352_v24, 2  ;;  %vm3070_vm2 = vcmp.ge.s32.totalorder %v2088_v43, 1 }
 0x1ad   : > { %v614_v20 = vadd.f32 %v611_v48, %v2205_v21  ;;  %v617_v53 = vmul.f32 0.13533528, %v608_v46  ;;  %v802_v54 = vmul.f32 0.13533528, %v793_v49  ;;  %v812_v55 = vsel %vm331_vm4, %v809_v13, %v807_v35 }
 0x1ae   : > { %446 = vrot.lane.b32.xlu0 %v2230_v47, %s1700_s29  ;;  %v833_v6 = vsel %vm354_vm6, %v830_v25, %v828_v51  ;;  %v821_v59 = vsel %vm341_vm5, %v818_v27, %v816_v26  ;;  %v842_v21 = vsel %vm364_vm7, %v839_v17, %v837_v52  ;;  %v813_v9 = vsel %vm3070_vm2, %v812_v55, 0.0 }
 0x1af   : > { %v2408_v56 = vadd.f32 %v617_v53, %v614_v20  ;;  %v805_v57 = vadd.f32 %v802_v54, %v799_v31  ;;  %vm3071_vm11 = vcmp.ge.s32.totalorder %v2088_v43, 2  ;;  %v824_v0 = vsel %vm259_vm3, %v821_v59, 0.0 }
 0x1b0   : > { %v834_v10 = vsel %vm3071_vm11, %v833_v6, 0.0  ;;  %v845_v32 = vsel %vm3072_vm0, %v842_v21, 0.0  ;;  %vm3073_vm1 = vcmp.lt.s32.totalorder %v2088_v43, 15  ;;  %vm3074_vm8 = vcmp.lt.s32.totalorder %v2088_v43, 14 }
 0x1b1   : > { %673 = vrot.lane.b32.xlu1 %v2408_v56, %s1699_s22  ;;  %v808_v61 = vrot.slane %v805_v57, 7  ;;  %v817_v62 = vrot.slane %v805_v57, 1  ;;  %v829_v63 = vrot.slane %v805_v57, 6  ;;  %v838_v1 = vrot.slane %v805_v57, 2 }
 0x1b2   : > { %450 = vrot.lane.b32.xlu0 %v2307_v41, %s1700_s29  ;;  %v386_v29 = vrot.slane %v2230_v47, 7  ;;  %v388_v46 = vrot.slane %v2307_v41, 7  ;;  %v402_v54 = vrot.slane %v2273_v15, 1  ;;  %vm3081_vm11 = vcmp.ge.s32.totalorder %v2058_v18, 1 }
 0x1b3   : > { %v820_v36 = vsel %vm341_vm5, %v816_v26, %v817_v62  ;;  %v841_v37 = vsel %vm364_vm7, %v837_v52, %v838_v1  ;;  %v811_v12 = vsel %vm331_vm4, %v807_v35, %v808_v61  ;;  %v819_v11 = vsel %vm341_vm5, %v817_v62, %v818_v27  ;;  %vm3082_vm0 = vmmov %vm3081_vm11 }
 0x1b4   : > { %v822_v16 = vsel %vm3073_vm1, %v820_v36, 0.0  ;;  %v843_v19 = vsel %vm3074_vm8, %v841_v37, 0.0  ;;  %v814_v7 = vsel %vm252_vm12, %v811_v12, 0.0  ;;  %v823_v33 = vsel %vm258_vm13, %v819_v11, 0.0  ;;  %vm3084_vm8 = vmmov %vm3082_vm0 }
 0x1b5   : > { %448 = vrot.lane.b32.xlu1 %v2273_v15, %s1700_s29  ;;  %v825_v58 = vadd.f32 %v822_v16, %v813_v9  ;;  %v846_v28 = vadd.f32 %v843_v19, %v834_v10  ;;  %v826_v2 = vadd.f32 %v823_v33, %v814_v7  ;;  %v832_v34 = vsel %vm354_vm6, %v828_v51, %v829_v63 }
 0x1b6   : > { %683 = vrot.lane.b32.xlu0 %v2375_v50, %s1700_s29  ;;  %v835_v39 = vsel %vm255_vm14, %v832_v34, 0.0  ;;  %v840_v40 = vsel %vm364_vm7, %v838_v1, %v839_v17  ;;  %v810_v8 = vsel %vm331_vm4, %v808_v61, %v809_v13  ;;  %v831_v44 = vsel %vm354_vm6, %v829_v63, %v830_v25  ;;  %vm3075_vm6 = vmmov %vm3070_vm2 }
 0x1b7   : > { %v849_v4 = vmul.f32 0.60653067, %v825_v58  ;;  %v844_v23 = vsel %vm261_vm15, %v840_v40, 0.0  ;;  %v815_v45 = vsel %vm253_vm9, %v810_v8, 0.0  ;;  %v850_v42 = vmul.f32 0.60653067, %v826_v2  ;;  %vm3076_vm7 = vmmov %vm3073_vm1 }
 0x1b8   : > { %v847_v60 = vadd.f32 %v844_v23, %v835_v39  ;;  %v827_v38 = vadd.f32 %v824_v0, %v815_v45  ;;  %v836_v27 = vsel %vm256_vm10, %v831_v44, 0.0  ;;  %v855_v25 = vmul.f32 0.13533528, %v846_v28  ;;  %vm3077_vm10 = vmmov %vm3070_vm2 }
 0x1b9   : > { %681 = vrot.lane.b32.xlu1 %v2354_v3, %s1700_s29  ;;  %v852_v13 = vadd.f32 %v849_v4, %v2352_v24  ;;  %v848_v17 = vadd.f32 %v845_v32, %v836_v27  ;;  %v853_v48 = vadd.f32 %v850_v42, %v805_v57  ;;  %v387_v51 = vrot.slane %v2273_v15, 7  ;;  %vm3078_vm14 = vmmov %vm3073_vm1 }
 0x1ba   : > { %v851_v49 = vmul.f32 0.60653067, %v827_v38  ;;  %v856_v35 = vmul.f32 0.13533528, %v847_v60  ;;  %v391_v20 = vsel %vm331_vm4, %v388_v46, %v386_v29  ;;  %v2492_v57 = vmul.f32 2.0, %v2230_v47  ;;  %vm3079_vm15 = vmmov %vm3070_vm2 }
 0x1bb   : > { %v2467_v31 = vadd.f32 %v855_v25, %v852_v13  ;;  %v857_v52 = vmul.f32 0.13533528, %v848_v17  ;;  %v390_v55 = vsel %vm331_vm4, %v386_v29, %v387_v51  ;;  %v392_v6 = vsel %vm3075_vm6, %v391_v20, 0.0  ;;  %vm3080_vm2 = vmmov %vm3073_vm1 }
 0x1bc   : > { %v854_v26 = vadd.f32 %v851_v49, %v2377_v5  ;;  %v2475_v24 = vadd.f32 %v856_v35, %v853_v48  ;;  %v401_v5 = vrot.slane %v2230_v47, 1  ;;  %v389_v59 = vsel %vm331_vm4, %v387_v51, %v388_v46  ;;  %vm3083_vm1 = vmmov %vm3082_vm0 }
 0x1bd   : > { %685 = vrot.lane.b32.xlu1 %v2408_v56, %s1700_s29  ;;  %909 = vrot.lane.b32.xlu0 %v2467_v31, %s1699_s22  ;;  %v393_v21 = vsel %vm252_vm12, %v390_v55, 0.0  ;;  %v403_v61 = vrot.slane %v2307_v41, 1  ;;  %v398_v62 = vadd.f32 %v2492_v57, %v392_v6  ;;  %v2503_v1 = vmul.f32 2.0, %v2273_v15 }
 0x1be   : > { %v2479_v53 = vadd.f32 %v857_v52, %v854_v26  ;;  %v405_v63 = vsel %vm341_vm5, %v401_v5, %v402_v54  ;;  %v394_v47 = vsel %vm253_vm9, %v389_v59, 0.0  ;;  %v2512_v9 = vmul.f32 2.0, %v2307_v41 }
 0x1bf   : > { %v621_v10 = vrot.slane %v2354_v3, 7  ;;  %v623_v0 = vrot.slane %v2408_v56, 7  ;;  %v399_v32 = vadd.f32 %v2503_v1, %v393_v21  ;;  %v407_v15 = vsel %vm3076_vm7, %v405_v63, 0.0 }
 0x1c0   : > { %v404_v36 = vsel %vm341_vm5, %v402_v54, %v403_v61  ;;  %v410_v37 = vadd.f32 %v407_v15, %v398_v62  ;;  %v400_v12 = vadd.f32 %v2512_v9, %v394_v47  ;;  %v406_v11 = vsel %vm341_vm5, %v403_v61, %v401_v5 }
 0x1c1   : > { %911 = vrot.lane.b32.xlu1 %v2475_v24, %s1699_s22  ;;  %913 = vrot.lane.b32.xlu0 %v2479_v53, %s1699_s22  ;;  %v622_v41 = vrot.slane %v2375_v50, 7  ;;  %v626_v16 = vsel %vm331_vm4, %v623_v0, %v621_v10  ;;  %v408_v19 = vsel %vm258_vm13, %v404_v36, 0.0  ;;  %v409_v7 = vsel %vm259_vm3, %v406_v11, 0.0 }
 0x1c2   : > { %v411_v33 = vadd.f32 %v408_v19, %v399_v32  ;;  %v412_v58 = vadd.f32 %v409_v7, %v400_v12  ;;  %v637_v28 = vrot.slane %v2375_v50, 1  ;;  %v636_v2 = vrot.slane %v2354_v3, 1 }
 0x1c3   : > { %v627_v34 = vsel %vm3077_vm10, %v626_v16, 0.0  ;;  %v625_v39 = vsel %vm331_vm4, %v621_v10, %v622_v41  ;;  %v2543_v40 = vmul.f32 2.0, %v2354_v3  ;;  %v624_v8 = vsel %vm331_vm4, %v622_v41, %v623_v0  ;;  %vm3087_vm10 = vmmov %vm3082_vm0 }
 0x1c4   : > { %v638_v44 = vrot.slane %v2408_v56, 1  ;;  %v640_v23 = vsel %vm341_vm5, %v636_v2, %v637_v28  ;;  %v628_v45 = vsel %vm252_vm12, %v625_v39, 0.0  ;;  %v629_v29 = vsel %vm253_vm9, %v624_v8, 0.0 }
 0x1c5   : > { %921 = vrot.lane.b32.xlu1 %v2467_v31, %s1700_s29  ;;  %923 = vrot.lane.b32.xlu0 %v2475_v24, %s1700_s29  ;;  %v633_v4 = vadd.f32 %v2543_v40, %v627_v34  ;;  %v2558_v3 = vmul.f32 2.0, %v2375_v50  ;;  %v2561_v60 = vmul.f32 2.0, %v2408_v56  ;;  %v861_v42 = vrot.slane %v2467_v31, 7 }
 0x1c6   : > { %v863_v38 = vrot.slane %v2479_v53, 7  ;;  %v639_v27 = vsel %vm341_vm5, %v637_v28, %v638_v44  ;;  %v642_v13 = vsel %vm3078_vm14, %v640_v23, 0.0  ;;  %v641_v50 = vsel %vm341_vm5, %v638_v44, %v636_v2 }
 0x1c7   : > { %v634_v25 = vadd.f32 %v2558_v3, %v628_v45  ;;  %v645_v17 = vadd.f32 %v642_v13, %v633_v4  ;;  %v635_v46 = vadd.f32 %v2561_v60, %v629_v29  ;;  %v862_v56 = vrot.slane %v2475_v24, 7 }
 0x1c8   : > { %v866_v48 = vsel %vm331_vm4, %v863_v38, %v861_v42  ;;  %v643_v49 = vsel %vm258_vm13, %v639_v27, 0.0  ;;  %v644_v35 = vsel %vm259_vm3, %v641_v50, 0.0  ;;  %v877_v52 = vrot.slane %v2475_v24, 1 }
 0x1c9   : > { %925 = vrot.lane.b32.xlu1 %v2479_v53, %s1700_s29  ;;  %413 = vrot.lane.b32.xlu0 %v410_v37, %s1699_s22  ;;  %v646_v26 = vadd.f32 %v643_v49, %v634_v25  ;;  %v647_v51 = vadd.f32 %v644_v35, %v635_v46  ;;  %v876_v20 = vrot.slane %v2467_v31, 1  ;;  %v867_v54 = vsel %vm3079_vm15, %v866_v48, 0.0 }
 0x1ca   : > { %v865_v5 = vsel %vm331_vm4, %v861_v42, %v862_v56  ;;  %v2591_v55 = vmul.f32 2.0, %v2467_v31  ;;  %v864_v6 = vsel %vm331_vm4, %v862_v56, %v863_v38  ;;  %v878_v59 = vrot.slane %v2479_v53, 1 }
 0x1cb   : > { %v880_v61 = vsel %vm341_vm5, %v876_v20, %v877_v52  ;;  %v868_v62 = vsel %vm252_vm12, %v865_v5, 0.0  ;;  %v869_v63 = vsel %vm253_vm9, %v864_v6, 0.0  ;;  %v2606_v31 = vmul.f32 2.0, %v2475_v24 }
 0x1cc   : > { %v873_v21 = vadd.f32 %v2591_v55, %v867_v54  ;;  %v2609_v47 = vmul.f32 2.0, %v2479_v53  ;;  %v879_v10 = vsel %vm341_vm5, %v877_v52, %v878_v59  ;;  %v882_v0 = vsel %vm3080_vm2, %v880_v61, 0.0  ;;  %vm3090_vm2 = vmmov %vm3082_vm0 }
 0x1cd   : > { %415 = vrot.lane.b32.xlu1 %v411_v33, %s1699_s22  ;;  %417 = vrot.lane.b32.xlu0 %v412_v58, %s1699_s22  ;;  %v874_v32 = vadd.f32 %v2606_v31, %v868_v62  ;;  %v883_v24 = vsel %vm258_vm13, %v879_v10, 0.0  ;;  %vm3085_vm6 = vcmp.lt.s32.totalorder %v2058_v18, 127 }
 0x1ce   : > { %v885_v15 = vadd.f32 %v882_v0, %v873_v21  ;;  %v875_v36 = vadd.f32 %v2609_v47, %v869_v63  ;;  %vm3086_vm7 = vmmov %vm3085_vm6 }
 0x1cf   : > { %v886_v12 = vadd.f32 %v883_v24, %v874_v32  ;;  %vm3088_vm14 = vmmov %vm3085_vm6 }
 0x1d0   : > { %vm3089_vm15 = vmmov %vm3085_vm6 }
 0x1d1   : > { %422 = vrot.lane.b32.xlu1 %v410_v37, %s1700_s29  ;;  %424 = vrot.lane.b32.xlu0 %v411_v33, %s1700_s29  ;;  %v881_v37 = vsel %vm341_vm5, %v878_v59, %v876_v20 }
 0x1d2   : > { %v884_v53 = vsel %vm259_vm3, %v881_v37, 0.0 }
 0x1d3   : > { %v887_v11 = vadd.f32 %v884_v53, %v875_v36 }
 0x1d5   : > { %426 = vrot.lane.b32.xlu1 %v412_v58, %s1700_s29  ;;  %648 = vrot.lane.b32.xlu0 %v645_v17, %s1699_s22 }
 0x1d9   : > { %650 = vrot.lane.b32.xlu1 %v646_v26, %s1699_s22  ;;  %652 = vrot.lane.b32.xlu0 %v647_v51, %s1699_s22 }
 0x1dd   : > { %657 = vrot.lane.b32.xlu1 %v645_v17, %s1700_s29  ;;  %659 = vrot.lane.b32.xlu0 %v646_v26, %s1700_s29 }
 0x1e1   : > { %661 = vrot.lane.b32.xlu1 %v647_v51, %s1700_s29  ;;  %888 = vrot.lane.b32.xlu0 %v885_v15, %s1699_s22 }
 0x1e5   : > { %890 = vrot.lane.b32.xlu1 %v886_v12, %s1699_s22  ;;  %892 = vrot.lane.b32.xlu0 %v887_v11, %s1699_s22 }
 0x1e9   : > { %897 = vrot.lane.b32.xlu1 %v885_v15, %s1700_s29  ;;  %899 = vrot.lane.b32.xlu0 %v886_v12, %s1700_s29 }
 0x1ed   : > { %901 = vrot.lane.b32.xlu1 %v887_v11, %s1700_s29 }
 0x207   : > { %v435_v41 = vpop.permute.xlu0 %434 }
 0x208   : > { %v440_v44 = vsel %vm3084_vm8, %v435_v41, 0.0  ;;  %vm3093_vm8 = vmmov %vm3083_vm1 }
 0x209   : > { %v443_v46 = vadd.f32 %v440_v44, %v2492_v57 }
 0x20d   : > { %v437_v19 = vpop.permute.xlu1 %436 }
 0x20e   : > { %v441_v34 = vsel %vm3081_vm11, %v437_v19, 0.0  ;;  %vm3091_vm11 = vmmov %vm3085_vm6 }
 0x20f   : > { %v444_v45 = vadd.f32 %v441_v34, %v2503_v1 }
 0x211   : > { %v439_v16 = vpop.permute.xlu0 %438 }
 0x212   : > { %v442_v39 = vsel %vm3082_vm0, %v439_v16, 0.0  ;;  %vm3092_vm0 = vmmov %vm3085_vm6 }
 0x213   : > { %v445_v29 = vadd.f32 %v442_v39, %v2512_v9 }
 0x219   : > { %v670_v33 = vpop.permute.xlu1 %669 }
 0x21a   : > { %v675_v27 = vsel %vm3087_vm10, %v670_v33, 0.0  ;;  %vm3096_vm10 = vmmov %vm3092_vm0 }
 0x21b   : > { %v678_v48 = vadd.f32 %v675_v27, %v2543_v40 }
 0x21c   : > { %v672_v7 = vpop.permute.xlu0 %671 }
 0x21d   : > { %v676_v8 = vsel %vm3083_vm1, %v672_v7, 0.0 }
 0x21e   : > { %v679_v13 = vadd.f32 %v676_v8, %v2558_v3 }
 0x220   : > { %v447_v58 = vpop.permute.xlu0 %446 }
 0x221   : > { %v452_v25 = vsel %vm3088_vm14, %v447_v58, 0.0  ;;  %vm3097_vm14 = vmmov %vm3092_vm0 }
 0x222   : > { %v2661_v49 = vadd.f32 %v452_v25, %v443_v46 }
 0x223   : > { %v674_v28 = vpop.permute.xlu1 %673 }
 0x224   : > { %v451_v2 = vpop.permute.xlu0 %450  ;;  %v677_v3 = vsel %vm3090_vm2, %v674_v28, 0.0  ;;  %v458_v6 = vrot.slane %v2661_v49, 7  ;;  %vm3099_vm2 = vcmp.lt.s32.totalorder %v2088_v43, 15 }
 0x225   : > { %v454_v23 = vsel %vm3085_vm6, %v451_v2, 0.0  ;;  %v680_v20 = vadd.f32 %v677_v3, %v2561_v60  ;;  %vm3094_vm6 = vmmov %vm3092_vm0 }
 0x226   : > { %v2654_v9 = vadd.f32 %v454_v23, %v445_v29 }
 0x227   : > { %v449_v4 = vpop.permute.xlu1 %448 }
 0x228   : > { %v453_v42 = vsel %vm3086_vm7, %v449_v4, 0.0  ;;  %v684_v38 = vpop.permute.xlu0 %683  ;;  %v469_v51 = vrot.slane %v2654_v9, 1  ;;  %vm3095_vm7 = vmmov %vm3083_vm1 }
 0x229   : > { %v688_v17 = vsel %vm3089_vm15, %v684_v38, 0.0  ;;  %v2652_v1 = vadd.f32 %v453_v42, %v444_v45  ;;  %vm3098_vm15 = vcmp.ge.s32.totalorder %v2088_v43, 1 }
 0x22a   : > { %v2656_v56 = vadd.f32 %v688_v17, %v679_v13 }
 0x22b   : > { %v682_v50 = vpop.permute.xlu1 %681  ;;  %v459_v26 = vrot.slane %v2652_v1, 7  ;;  %v468_v57 = vrot.slane %v2652_v1, 1 }
 0x22c   : > { %v687_v35 = vsel %vm3091_vm11, %v682_v50, 0.0  ;;  %v694_v40 = vrot.slane %v2656_v56, 7  ;;  %v703_v10 = vrot.slane %v2656_v56, 1  ;;  %vm3100_vm11 = vmmov %vm3092_vm0 }
 0x22d   : > { %v2668_v52 = vadd.f32 %v687_v35, %v678_v48  ;;  %v462_v62 = vsel %vm331_vm4, %v458_v6, %v459_v26  ;;  %v470_v60 = vsel %vm341_vm5, %v468_v57, %v469_v51  ;;  %v467_v48 = vrot.slane %v2661_v49, 1 }
 0x22e   : > { %v465_v24 = vsel %vm252_vm12, %v462_v62, 0.0  ;;  %v474_v53 = vsel %vm258_vm13, %v470_v60, 0.0 }
 0x22f   : > { %v686_v54 = vpop.permute.xlu1 %685  ;;  %v910_v5 = vpop.permute.xlu0 %909  ;;  %v693_v59 = vrot.slane %v2668_v52, 7  ;;  %v2716_v39 = vsub.f32 %v465_v24, %v474_v53  ;;  %v702_v62 = vrot.slane %v2668_v52, 1  ;;  %v472_v60 = vsel %vm341_vm5, %v469_v51, %v467_v48 }
 0x230   : > { %v689_v21 = vsel %vm3092_vm0, %v686_v54, 0.0  ;;  %v915_v37 = vsel %vm3093_vm8, %v910_v5, 0.0  ;;  %vm3101_vm8 = vmmov %vm3083_vm1 }
 0x231   : > { %v2676_v61 = vadd.f32 %v689_v21, %v680_v20  ;;  %v697_v63 = vsel %vm331_vm4, %v693_v59, %v694_v40  ;;  %v918_v19 = vadd.f32 %v915_v37, %v2591_v55  ;;  %v706_v24 = vsel %vm341_vm5, %v702_v62, %v703_v10 }
 0x232   : > { %v700_v11 = vsel %vm252_vm12, %v697_v63, 0.0 }
 0x233   : > { %v704_v0 = vrot.slane %v2676_v61, 1  ;;  %v912_v32 = vpop.permute.xlu1 %911  ;;  %v914_v15 = vpop.permute.xlu0 %913  ;;  %v695_v54 = vrot.slane %v2676_v61, 7 }
 0x234   : > { %v916_v36 = vsel %vm3083_vm1, %v912_v32, 0.0  ;;  %v917_v2 = vsel %vm3095_vm7, %v914_v15, 0.0  ;;  %vm3103_vm7 = vmmov %vm3092_vm0 }
 0x235   : > { %v705_v12 = vsel %vm341_vm5, %v703_v10, %v704_v0  ;;  %v919_v16 = vadd.f32 %v916_v36, %v2606_v31  ;;  %v920_v4 = vadd.f32 %v917_v2, %v2609_v47  ;;  %v460_v47 = vrot.slane %v2654_v9, 7 }
 0x236   : > { %v709_v41 = vsel %vm258_vm13, %v705_v12, 0.0  ;;  %v471_v9 = vsel %vm341_vm5, %v467_v48, %v468_v57  ;;  %v698_v52 = vsel %vm331_vm4, %v695_v54, %v693_v59  ;;  %v696_v10 = vsel %vm331_vm4, %v694_v40, %v695_v54 }
 0x237   : > { %v922_v7 = vpop.permute.xlu1 %921  ;;  %v924_v33 = vpop.permute.xlu0 %923  ;;  %v2708_v58 = vsub.f32 %v700_v11, %v709_v41  ;;  %v463_v20 = vsel %vm331_vm4, %v460_v47, %v458_v6  ;;  %v473_v57 = vsel %vm3099_vm2, %v471_v9, 0.0  ;;  %v461_v6 = vsel %vm331_vm4, %v459_v26, %v460_v47 }
 0x238   : > { %v927_v28 = vsel %vm3094_vm6, %v922_v7, 0.0  ;;  %v928_v34 = vsel %vm3096_vm10, %v924_v33, 0.0  ;;  %v464_v63 = vsel %vm3098_vm15, %v463_v20, 0.0  ;;  %v475_v26 = vsel %vm259_vm3, %v472_v60, 0.0  ;;  %vm3102_vm6 = vmmov %vm3098_vm15 }
 0x239   : > { %v2718_v8 = vadd.f32 %v927_v28, %v918_v19  ;;  %v2720_v31 = vadd.f32 %v928_v34, %v919_v16  ;;  %v748_v55 = vadd.f32 %v2708_v58, %v2716_v39  ;;  %v476_v53 = vsub.f32 %v464_v63, %v473_v57  ;;  %vm3104_vm10 = vmmov %vm3099_vm2 }
 0x23a   : > { %v466_v11 = vsel %vm253_vm9, %v461_v6, 0.0  ;;  %v699_v41 = vsel %vm3102_vm6, %v698_v52, 0.0  ;;  %v707_v16 = vsel %vm341_vm5, %v704_v0, %v702_v62  ;;  %v708_v2 = vsel %vm3104_vm10, %v706_v24, 0.0  ;;  %vm3106_vm15 = vmmov %vm3083_vm1 }
 0x23b   : > { %v933_v44 = vrot.slane %v2718_v8, 7  ;;  %v926_v23 = vpop.permute.xlu1 %925  ;;  %v934_v45 = vrot.slane %v2720_v31, 7  ;;  %v414_v29 = vpop.permute.xlu0 %413  ;;  %v943_v13 = vrot.slane %v2720_v31, 1  ;;  %v482_v34 = vmul.f32 %v476_v53, %v476_v53  ;;  %vm3107_vm2 = vmmov %vm3083_vm1 }
 0x23c   : > { %v929_v42 = vsel %vm3097_vm14, %v926_v23, 0.0  ;;  %v419_v1 = vsel %vm3083_vm1, %v414_v29, 0.0  ;;  %v711_v56 = vsub.f32 %v699_v41, %v708_v2  ;;  %vm3105_vm14 = vmmov %vm3083_vm1  ;;  %v710_v61 = vsel %vm259_vm3, %v707_v16, 0.0 }
 0x23d   : > { %v2729_v38 = vadd.f32 %v929_v42, %v920_v4  ;;  %v937_v27 = vsel %vm331_vm4, %v933_v44, %v934_v45  ;;  %v701_v0 = vsel %vm253_vm9, %v696_v10, 0.0  ;;  %v942_v23 = vrot.slane %v2718_v8, 1  ;;  %vm3110_vm6 = vmmov %vm3104_vm10 }
 0x23e   : > { %v940_v50 = vsel %vm252_vm12, %v937_v27, 0.0  ;;  %v713_v20 = vsub.f32 %v701_v0, %v710_v61  ;;  %v717_v62 = vmul.f32 %v711_v56, %v711_v56  ;;  %v718_v60 = vmul.f32 %v2708_v58, %v2708_v58  ;;  %vm3112_vm10 = vmmov %vm3083_vm1 }
 0x23f   : > { %v944_v25 = vrot.slane %v2729_v38, 1  ;;  %v416_v17 = vpop.permute.xlu1 %415  ;;  %v418_v46 = vpop.permute.xlu0 %417  ;;  %v935_v29 = vrot.slane %v2729_v38, 7 }
 0x240   : > { %v420_v59 = vsel %vm3101_vm8, %v416_v17, 0.0  ;;  %v421_v40 = vsel %vm3105_vm14, %v418_v46, 0.0  ;;  %vm3109_vm8 = vmmov %vm3092_vm0  ;;  %v719_v53 = vmul.f32 %v713_v20, %v713_v20 }
 0x241   : > { %v945_v3 = vsel %vm341_vm5, %v943_v13, %v944_v25  ;;  %v947_v10 = vsel %vm341_vm5, %v944_v25, %v942_v23  ;;  %v936_v16 = vsel %vm331_vm4, %v934_v45, %v935_v29  ;;  %vm3113_vm14 = vmmov %vm3083_vm1 }
 0x242   : > { %v949_v35 = vsel %vm258_vm13, %v945_v3, 0.0  ;;  %v941_v25 = vsel %vm253_vm9, %v936_v16, 0.0  ;;  %v950_v31 = vsel %vm259_vm3, %v947_v10, 0.0  ;;  %vm3116_vm3 = vmmov %vm3083_vm1 }
 0x243   : > { %v423_v5 = vpop.permute.xlu1 %422  ;;  %v425_v49 = vpop.permute.xlu0 %424  ;;  %v2756_v21 = vsub.f32 %v940_v50, %v949_v35  ;;  %v483_v35 = vmul.f32 %v2716_v39, %v2716_v39  ;;  %v953_v22 = vsub.f32 %v941_v25, %v950_v31  ;;  %vm3117_vm9 = vmmov %vm3092_vm0 }
 0x244   : > { %v428_v51 = vsel %vm3100_vm11, %v423_v5, 0.0  ;;  %v429_v37 = vsel %vm3092_vm0, %v425_v49, 0.0  ;;  %vm3108_vm11 = vmmov %vm3092_vm0  ;;  %v946_v5 = vsel %vm341_vm5, %v942_v23, %v943_v13 }
 0x245   : > { %v2766_v32 = vadd.f32 %v2756_v21, %v748_v55  ;;  %v431_v12 = vsub.f32 %v419_v1, %v428_v51  ;;  %v432_v19 = vsub.f32 %v420_v59, %v429_v37  ;;  %v478_v55 = vsub.f32 %v466_v11, %v475_v26 }
 0x246   : > { %v948_v8 = vsel %vm3110_vm6, %v946_v5, 0.0  ;;  %v958_v61 = vmul.f32 %v2756_v21, %v2756_v21 }
 0x247   : > { %v427_v15 = vpop.permute.xlu1 %426  ;;  %v649_v36 = vpop.permute.xlu0 %648  ;;  %v479_v4 = vmul.f32 %v431_v12, %v431_v12  ;;  %v480_v27 = vmul.f32 %v432_v19, %v432_v19  ;;  %v484_v58 = vmul.f32 %v478_v55, %v478_v55 }
 0x248   : > { %v430_v28 = vsel %vm3103_vm7, %v427_v15, 0.0  ;;  %v654_v46 = vsel %vm3107_vm2, %v649_v36, 0.0  ;;  %v938_v15 = vsel %vm331_vm4, %v935_v29, %v933_v44  ;;  %vm3111_vm7 = vcmp.ge.s32.totalorder %v2088_v43, 1  ;;  %vm3115_vm2 = vmmov %vm3092_vm0 }
 0x249   : > { %v433_v42 = vsub.f32 %v421_v40, %v430_v28  ;;  %v2824_v49 = vadd.f32 %v482_v34, %v479_v4  ;;  %v2832_v36 = vadd.f32 %v483_v35, %v480_v27  ;;  %v939_v11 = vsel %vm3111_vm7, %v938_v15, 0.0 }
 0x24a   : > { %v951_v43 = vsub.f32 %v939_v11, %v948_v8 }
 0x24b   : > { %v651_v7 = vpop.permute.xlu1 %650  ;;  %v653_v33 = vpop.permute.xlu0 %652  ;;  %v481_v63 = vmul.f32 %v433_v42, %v433_v42  ;;  %1331 = vrsqrt.f32 %v2824_v49  ;;  %vm490_vm6 = vcmp.eq.f32.partialorder %v2824_v49, inf  ;;  %vm492_vm7 = vcmp.eq.f32.partialorder %v2824_v49, 0.0 }
 0x24c   : > { %v655_v50 = vsel %vm3106_vm15, %v651_v7, 0.0  ;;  %v656_v13 = vsel %vm3083_vm1, %v653_v33, 0.0  ;;  %1333 = vrsqrt.f32 %v2832_v36  ;;  %vm3114_vm15 = vmmov %vm3092_vm0  ;;  %v957_v56 = vmul.f32 %v951_v43, %v951_v43 }
 0x24d   : > { %v2845_v44 = vadd.f32 %v484_v58, %v481_v63 }
 0x24f   : > { %v658_v47 = vpop.permute.xlu1 %657  ;;  %v660_v17 = vpop.permute.xlu0 %659 }
 0x250   : > { %v663_v48 = vsel %vm3108_vm11, %v658_v47, 0.0  ;;  %v664_v3 = vsel %vm3092_vm0, %v660_v17, 0.0  ;;  %vm497_vm11 = vcmp.eq.f32.partialorder %v2832_v36, inf  ;;  %vm499_vm0 = vcmp.eq.f32.partialorder %v2832_v36, 0.0 }
 0x251   : > { %v666_v9 = vsub.f32 %v654_v46, %v663_v48  ;;  %v667_v54 = vsub.f32 %v655_v50, %v664_v3 }
 0x253   : > { %v714_v57 = vmul.f32 %v666_v9, %v666_v9  ;;  %v662_v6 = vpop.permute.xlu1 %661  ;;  %v715_v52 = vmul.f32 %v667_v54, %v667_v54  ;;  %v747_v51 = vadd.f32 %v667_v54, %v432_v19  ;;  %v889_v39 = vpop.permute.xlu0 %888  ;;  %v959_v9 = vmul.f32 %v953_v22, %v953_v22 }
 0x254   : > { %v665_v37 = vsel %vm3109_vm8, %v662_v6, 0.0  ;;  %v894_v33 = vsel %vm3113_vm14, %v889_v39, 0.0  ;;  %v1028_v54 = vand.u32 2147483647, %v2766_v32  ;;  %v500_v39 = vand.u32 2147483648, %v2832_v36 }
 0x255   : > { %v2838_v24 = vadd.f32 %v717_v62, %v714_v57  ;;  %v668_v1 = vsub.f32 %v656_v13, %v665_v37  ;;  %v2840_v26 = vadd.f32 %v718_v60, %v715_v52  ;;  %v1332_v27 = vpop.eup %1331  ;;  %v493_v37 = vand.u32 2147483648, %v2824_v49 }
 0x256   : > { %v1334_v48 = vpop.eup %1333  ;;  %v489_v6 = vmul.f32 %v1332_v27, %v2824_v49 }
 0x257   : > { %v716_v59 = vmul.f32 %v668_v1, %v668_v1  ;;  %v891_v12 = vpop.permute.xlu1 %890  ;;  %v893_v41 = vpop.permute.xlu0 %892  ;;  %1335 = vrsqrt.f32 %v2838_v24  ;;  %v496_v60 = vmul.f32 %v1334_v48, %v2832_v36  ;;  %vm725_vm14 = vcmp.eq.f32.partialorder %v2838_v24, inf }
 0x258   : > { %1337 = vrsqrt.f32 %v2840_v26  ;;  %v895_v45 = vsel %vm3112_vm10, %v891_v12, 0.0  ;;  %v896_v29 = vsel %vm3116_vm3, %v893_v41, 0.0  ;;  %vm504_vm10 = vcmp.eq.f32.partialorder %v2845_v44, inf }
 0x259   : > { %v2859_v19 = vadd.f32 %v719_v53, %v716_v59  ;;  %1339 = vrsqrt.f32 %v2845_v44  ;;  %v498_v58 = vsel %vm497_vm11, %v2832_v36, %v496_v60  ;;  %v491_v1 = vsel %vm490_vm6, %v2824_v49, %v489_v6 }
 0x25a   : > { %v507_v59 = vand.u32 2147483648, %v2845_v44  ;;  %v735_v41 = vand.u32 2147483648, %v2840_v26  ;;  %v728_v10 = vand.u32 2147483648, %v2838_v24  ;;  %v501_v16 = vsel %vm499_vm0, %v500_v39, %v498_v58 }
 0x25b   : > { %v898_v38 = vpop.permute.xlu1 %897  ;;  %v900_v7 = vpop.permute.xlu0 %899  ;;  %1341 = vrsqrt.f32 %v2859_v19  ;;  %v494_v43 = vsel %vm492_vm7, %v493_v37, %v491_v1  ;;  %vm727_vm3 = vcmp.eq.f32.partialorder %v2838_v24, 0.0  ;;  %vm741_vm11 = vcmp.eq.f32.partialorder %v2859_v19, 0.0 }
 0x25c   : > { %v903_v28 = vsel %vm3114_vm15, %v898_v38, 0.0  ;;  %v904_v2 = vsel %vm3115_vm2, %v900_v7, 0.0  ;;  %vm732_vm15 = vcmp.eq.f32.partialorder %v2840_v26, inf  ;;  %vm734_vm2 = vcmp.eq.f32.partialorder %v2840_v26, 0.0 }
 0x25d   : > { %v906_v34 = vsub.f32 %v894_v33, %v903_v28  ;;  %v907_v55 = vsub.f32 %v895_v45, %v904_v2 }
 0x25f   : > { %v954_v4 = vmul.f32 %v906_v34, %v906_v34  ;;  %v902_v40 = vpop.permute.xlu1 %901  ;;  %v955_v0 = vmul.f32 %v907_v55, %v907_v55  ;;  %v987_v23 = vadd.f32 %v907_v55, %v747_v51 }
 0x260   : > { %v905_v42 = vsel %vm3117_vm9, %v902_v40, 0.0  ;;  %vm739_vm9 = vcmp.eq.f32.partialorder %v2859_v19, inf }
 0x261   : > { %v2882_v47 = vadd.f32 %v957_v56, %v954_v4  ;;  %v908_v17 = vsub.f32 %v896_v29, %v905_v42  ;;  %v2884_v50 = vadd.f32 %v958_v61, %v955_v0  ;;  %v1027_v46 = vand.u32 2147483647, %v987_v23  ;;  %v1336_v21 = vpop.eup %1335 }
 0x262   : > { %v2887_v3 = vmul.f32 %v2766_v32, %v987_v23  ;;  %v1338_v20 = vpop.eup %1337  ;;  %v724_v32 = vmul.f32 %v1336_v21, %v2838_v24 }
 0x263   : > { %1343 = vrsqrt.f32 %v2882_v47  ;;  %v956_v35 = vmul.f32 %v908_v17, %v908_v17  ;;  %v1029_v5 = vmul.f32 0.41421318, %v1027_v46  ;;  %v1340_v62 = vpop.eup %1339  ;;  %v1031_v57 = vmul.f32 2.4142067, %v1027_v46 }
 0x264   : > { %1345 = vrsqrt.f32 %v2884_v50  ;;  %v731_v15 = vmul.f32 %v1338_v20, %v2840_v26  ;;  %v503_v53 = vmul.f32 %v1340_v62, %v2845_v44  ;;  %v726_v8 = vsel %vm725_vm14, %v2838_v24, %v724_v32 }
 0x265   : > { %v2893_v63 = vadd.f32 %v959_v9, %v956_v35  ;;  %vm2898_vm1 = vcmp.le.f32.partialorder %v1028_v54, %v1029_v5  ;;  %v1342_v51 = vpop.eup %1341  ;;  %vm2906_vm8 = vcmp.ge.f32.partialorder %v1028_v54, %v1031_v57  ;;  %v729_v25 = vsel %vm727_vm3, %v728_v10, %v726_v8 }
 0x266   : > { %v738_v12 = vmul.f32 %v1342_v51, %v2859_v19  ;;  %v733_v11 = vsel %vm732_vm15, %v2840_v26, %v731_v15  ;;  %v505_v31 = vsel %vm504_vm10, %v2845_v44, %v503_v53  ;;  %v742_v26 = vand.u32 2147483648, %v2859_v19 }
 0x267   : > { %1347 = vrsqrt.f32 %v2893_v63  ;;  %v736_v36 = vsel %vm734_vm2, %v735_v41, %v733_v11  ;;  %vm972_vm0 = vcmp.eq.f32.partialorder %v2884_v50, inf  ;;  %vm974_vm6 = vcmp.eq.f32.partialorder %v2884_v50, 0.0 }
 0x268   : > { %v740_v24 = vsel %vm739_vm9, %v2859_v19, %v738_v12  ;;  %vm965_vm7 = vcmp.eq.f32.partialorder %v2882_v47, inf  ;;  %v968_v33 = vand.u32 2147483648, %v2882_v47  ;;  %v975_v28 = vand.u32 2147483648, %v2884_v50 }
 0x269   : > { %v744_v2 = vadd.f32 %v729_v25, %v494_v43  ;;  %vm967_vm10 = vcmp.eq.f32.partialorder %v2882_v47, 0.0  ;;  %v745_v56 = vadd.f32 %v736_v36, %v501_v16  ;;  %v743_v40 = vsel %vm741_vm11, %v742_v26, %v740_v24 }
 0x26a   : > { %vm506_vm14 = vcmp.eq.f32.partialorder %v2845_v44, 0.0  ;;  %vm979_vm15 = vcmp.eq.f32.partialorder %v2893_v63, inf  ;;  %v982_v27 = vand.u32 2147483648, %v2893_v63  ;;  %vm981_vm2 = vcmp.eq.f32.partialorder %v2893_v63, 0.0 }
 0x26b   : > { %v508_v42 = vsel %vm506_vm14, %v507_v59, %v505_v31  ;;  %vm3123_vm3 = vcmp.lt.s32.totalorder %v2058_v18, 127 }
 0x26c   : > { %vm267_vm9 = vmand %vm258_vm13, %vm3123_vm3 }
 0x26d   : > { %v1344_v38 = vpop.eup %1343  ;;  %vm3124_vm11 = vmmov %vm3123_vm3 }
 0x26e   : > { %v1346_v7 = vpop.eup %1345  ;;  %v964_v49 = vmul.f32 %v1344_v38, %v2882_v47 }
 0x26f   : > { %v971_v45 = vmul.f32 %v1346_v7, %v2884_v50 }
 0x270   : > { %v966_v34 = vsel %vm965_vm7, %v2882_v47, %v964_v49  ;;  %v746_v47 = vadd.f32 %v743_v40, %v508_v42 }
 0x271   : > { %v1348_v55 = vpop.eup %1347  ;;  %v973_v22 = vsel %vm972_vm0, %v2884_v50, %v971_v45  ;;  %v969_v4 = vsel %vm967_vm10, %v968_v33, %v966_v34  ;;  %vm270_vm0 = vmand %vm252_vm12, %vm3124_vm11  ;;  %vm1034_vm10 = vcmp.gt.f32.partialorder %v2887_v3, 0.0 }
 0x272   : > { %v976_v61 = vsel %vm974_vm6, %v975_v28, %v973_v22  ;;  %v984_v0 = vadd.f32 %v969_v4, %v744_v2  ;;  %v978_v23 = vmul.f32 %v1348_v55, %v2893_v63 }
 0x273   : > { %v985_v29 = vadd.f32 %v976_v61, %v745_v56 }
 0x274   : > { %v980_v17 = vsel %vm979_vm15, %v2893_v63, %v978_v23  ;;  %v1001_v50 = vrot.slane %v984_v0, 7 }
 0x275   : > { %v1002_v19 = vrot.slane %v985_v29, 7  ;;  %v983_v46 = vsel %vm981_vm2, %v982_v27, %v980_v17  ;;  %v998_v21 = vrot.slane %v985_v29, 1  ;;  %vm1039_vm15 = vcmp.ge.f32.partialorder %v985_v29, 10.0 }
 0x276   : > { %v986_v48 = vadd.f32 %v983_v46, %v746_v47 }
 0x277   : > { %v1003_v44 = vsel %vm331_vm4, %v1001_v50, %v1002_v19  ;;  %vm3122_vm4 = vcmp.ge.s32.totalorder %v2058_v18, 1  ;;  %v1703_v18 = vmov 0.0  }
 0x278   : > { %1013 = vrot.lane.b32.xlu1 %v1003_v44, %s1699_s22  ;;  %v1006_v35 = vsel %vm252_vm12, %v1003_v44, 0.0  ;;  %v999_v9 = vrot.slane %v986_v48, 1  ;;  %vm3125_vm6 = vmmov %vm3122_vm4 }
 0x279   : > { %v1007_v20 = vsub.f32 %v985_v29, %v1006_v35  ;;  %vm269_vm7 = vmand %vm258_vm13, %vm3125_vm6 }
 0x27a   : > { %v1000_v54 = vsel %vm341_vm5, %v998_v21, %v999_v9  ;;  %vm268_vm5 = vmand %vm252_vm12, %vm3122_vm4 }
 0x27b   : > { %1009 = vrot.lane.b32.xlu0 %v1000_v54, %s1700_s29  ;;  %v1004_v5 = vsel %vm258_vm13, %v1000_v54, 0.0  ;;  %vm3126_vm12 = vmmov %vm3122_vm4 }
 0x27c   : > { %v1005_v62 = vsub.f32 %v985_v29, %v1004_v5  ;;  %1022 = vrot.lane.b32.xlu1 %v1003_v44, %s1700_s29  ;;  %vm3127_vm13 = vmmov %vm3123_vm3 }
 0x27e   : > { %v1008_v60 = vmin.f32 %v1005_v62, %v1007_v20 }
 0x27f   : > { %1018 = vrot.lane.b32.xlu0 %v1000_v54, %s1699_s22 }
 0x280   : > { %993 = vrot.lane.b32.xlu1 %v985_v29, %s1699_s22 }
 0x283   : > { %989 = vrot.lane.b32.xlu0 %v985_v29, %s1700_s29 }
 0x2ea   : > { %v1014_v30 = vpop.permute.xlu1 %1013 }
 0x2eb   : > { %v1015_v57 = vsel %vm268_vm5, %v1014_v30, 0.0 }
 0x2ec   : > { %v1016_v39 = vsub.f32 %v985_v29, %v1015_v57 }
 0x2ed   : > { %v1010_v63 = vpop.permute.xlu0 %1009 }
 0x2ee   : > { %v1011_v6 = vsel %vm267_vm9, %v1010_v63, 0.0  ;;  %v1023_v32 = vpop.permute.xlu1 %1022 }
 0x2ef   : > { %v1024_v51 = vsel %vm270_vm0, %v1023_v32, 0.0  ;;  %v1012_v15 = vsub.f32 %v985_v29, %v1011_v6 }
 0x2f0   : > { %v1025_v37 = vsub.f32 %v985_v29, %v1024_v51 }
 0x2f1   : > { %v1019_v58 = vpop.permute.xlu0 %1018  ;;  %v1017_v12 = vmin.f32 %v1012_v15, %v1016_v39 }
 0x2f2   : > { %v1020_v1 = vsel %vm269_vm7, %v1019_v58, 0.0  ;;  %v994_v53 = vpop.permute.xlu1 %993 }
 0x2f3   : > { %v1021_v8 = vsub.f32 %v985_v29, %v1020_v1  ;;  %v995_v59 = vsel %vm3126_vm12, %v994_v53, 0.0 }
 0x2f4   : > { %v996_v41 = vsub.f32 %v985_v29, %v995_v59 }
 0x2f5   : > { %v1026_v11 = vmin.f32 %v1021_v8, %v1025_v37  ;;  %v990_v10 = vpop.permute.xlu0 %989 }
 0x2f6   : > { %v991_v14 = vsel %vm3127_vm13, %v990_v10, 0.0 }
 0x2f7   : > { %v1035_v16 = vsel %vm1034_vm10, %v1017_v12, %v1026_v11  ;;  %v992_v43 = vsub.f32 %v985_v29, %v991_v14 }
 0x2f8   : > { %v1036_v38 = vsel %vm2906_vm8, %v1008_v60, %v1035_v16 }
 0x2f9   : > { %v997_v25 = vmin.f32 %v992_v43, %v996_v41 }
 0x2fb   : > { %v1037_v31 = vsel %vm2898_vm1, %v997_v25, %v1036_v38 }
 0x2fc   : > { %vm1038_vm14 = vcmp.gt.f32.partialorder %v1037_v31, 0.0 }
 0x2fd   : > { %vm1040_vm2 = vmand %vm1038_vm14, %vm1039_vm15 }
 0x2fe   : > { %v1242_v3 = vsel %vm1040_vm2, 1.0, %v1703_v18 }
 0x2ff   : > { %1043 = vst [vmem:[%s58_s4] sm:$0xff] %v1242_v3 }
 0x300   : > { %1609 = shalt.err (!%p1606_p6)
}
 0x301   : > { %s1610_s19 = scalar_lea.hbm %s3002_s2, 128  ;;  %s1614_s20 = scalar_lea.hbm %s3048_s1, 256 }
 0x302   : > { %p1611_p8 = scmp.ne.s32.totalorder %s3002_s2, %s1610_s19  ;;  %p1615_p10 = scmp.lt.u32.totalorder %s3002_s2, %s3048_s1 }
 0x303   : > { %p1616_p12 = scmp.lt.u32.totalorder %s1614_s20, %s1610_s19  ;;  %p1618_p2 = scmp.lt.u32.totalorder %s1610_s19, %s3002_s2 }
 0x304   : > { %p1612_p9 = pnand %p1611_p8, %p3130_p11 }
 0x305   : > { %p1617_p0 = por %p1616_p12, %p1615_p10 }
 0x306   : > { %p1613_p7 = pneg %p1612_p9 }
 0x307   : > { %p1619_p13 = por %p1618_p2, %p1617_p0 }
 0x309   : > { %p1620_p1 = pnand %p1619_p13, %p1613_p7 }
 0x30b   : > { %1623 = shalt.err (!%p1620_p1)
}
 0x30c   : > { %1276 = dma.vmem_to_hbm [thread:$0]  (%p3130_p11), %s3004_s21, 128, %s3002_s2, %s1045_s27  }
 0x30d PF: > { %p1284_p3 = scmp.ge.s32.totalorder %s1688_s9, 1  ;;  %s1072_s24 = sand.u32 1, %s1676_s6  }
 0x30e   : > { %p3131_p4 = scmp.ne.s32.totalorder %s3062_s14, 0  ;;  %s1073_s13 = scalar_lea.sflag [#allocation5], %s1072_s24 }
 0x310   : > { %p1279_p5 = pnand %p1284_p3, %p3131_p4 }
 0x312   : > { %1671 = dma.done.wait (!%p1279_p5), %s1073_s13, 128  }
 0x313   : > { %1673 = vsyncadd (!%p1279_p5), %s1073_s13, 4294967168  ;;  %s14_s9 = sadd.s32 1, %s1688_s9   ;;  %s3132_s8 = sld [smem:[#allocation36_spill]] }
 0x314   : > { %p11_p6 = scmp.ge.s32.totalorder %s14_s9, 3   ;;  %s3133_s6 = smov %s1680_s7 }
 0x315   : > { %s3134_s7 = smov %s1750_s15 }
 0x316   :  { %13 = sbr.rel (!%p11_p6) target bundleno = 3 (0x3), region = 123 }
 0x31d   :  { %1078 = vsyncpa [#allocation5], 1 }
 0x31e   :  { %1080 = vsyncpa [#allocation5 + $0x1], 1 }
 0x31f   :  { %1081 = vsyncmov [#allocation3] }
 0x322   :  { %s1082_s14 = vpop.sfrf %1081 }
 0x323   :  { %p1247_p11 = scmp.ne.s32.totalorder %s1082_s14, 0 }
 0x325   :  { %1086 = shalt.err (%p1247_p11)  }
 0x326   :  { %1088 = vsyncmov [#allocation3 + $0x1] }
 0x329   :  { %s1089_s16 = vpop.sfrf %1088 }
 0x32a   :  { %p1248_p8 = scmp.ne.s32.totalorder %s1089_s16, 0 }
 0x32c   :  { %1093 = shalt.err (%p1248_p8)  }
 0x32d   :  { %1095 = vsyncmov [#allocation3 + $0x2] }
 0x330   :  { %s1096_s22 = vpop.sfrf %1095 }
 0x331   :  { %p1249_p9 = scmp.ne.s32.totalorder %s1096_s22, 0 }
 0x333   :  { %1100 = shalt.err (%p1249_p9)  }
 0x334   :  { %1102 = vsyncmov [#allocation3 + $0x3] }
 0x337   :  { %s1103_s15 = vpop.sfrf %1102 }
 0x338   :  { %p1250_p7 = scmp.ne.s32.totalorder %s1103_s15, 0 }
 0x33a   :  { %1107 = shalt.err (%p1250_p7)  }
 0x33b   :  { %1109 = vsyncmov [#allocation3 + $0x4] }
 0x33e   :  { %s1110_s9 = vpop.sfrf %1109 }
 0x33f   :  { %p1251_p10 = scmp.ne.s32.totalorder %s1110_s9, 0 }
 0x341   :  { %1114 = shalt.err (%p1251_p10)  }
 0x342   :  { %1116 = vsyncmov [#allocation3 + $0x5] }
 0x345   :  { %s1117_s0 = vpop.sfrf %1116 }
 0x346   :  { %p1252_p12 = scmp.ne.s32.totalorder %s1117_s0, 0 }
 0x348   :  { %1121 = shalt.err (%p1252_p12)  }
 0x349   :  { %1123 = vsyncmov [#allocation3 + $0x6] }
 0x34c   :  { %s1124_s1 = vpop.sfrf %1123 }
 0x34d   :  { %p1253_p0 = scmp.ne.s32.totalorder %s1124_s1, 0 }
 0x34f   :  { %1128 = shalt.err (%p1253_p0)  }
 0x350   :  { %1130 = vsyncmov [#allocation3 + $0x7] }
 0x353   :  { %s1131_s6 = vpop.sfrf %1130 }
 0x354   :  { %p1254_p2 = scmp.ne.s32.totalorder %s1131_s6, 0 }
 0x356   :  { %1135 = shalt.err (%p1254_p2)  }
 0x357   :  { %1137 = vsyncmov [#allocation3 + $0x8] }
 0x35a   :  { %s1138_s7 = vpop.sfrf %1137 }
 0x35b   :  { %p1255_p13 = scmp.ne.s32.totalorder %s1138_s7, 0 }
 0x35d   :  { %1142 = shalt.err (%p1255_p13)  }

</bundles_post_ra>
